<compile_context>
chip_gen: v5e
topology: v5e:2x2
jax: 0.10.0
libtpu: 0.0.40
codegen_flags: <defaults>
</compile_context>

<pallas_src>
import math
from functools import partial

import jax
import jax.numpy as jnp
from jax.experimental import pallas as pl
from jax.experimental.pallas import tpu as pltpu


# ----------------------------------------------------------------------------
# VMEM budget (generation-aware, with a safe fallback)
# ----------------------------------------------------------------------------

def _default_vmem_limit():
    try:
        cap = pltpu.get_tpu_info().vmem_capacity_bytes
        # leave double-buffer headroom below physical; cap at 100 MiB on big-VMEM parts
        return int(min(cap - (16 << 20), 100 << 20))
    except Exception:
        return None


_VMEM_LIMIT = _default_vmem_limit()


# ----------------------------------------------------------------------------
# Kernel 1: fused decoder unit (everything except the BN normalisation)
# ----------------------------------------------------------------------------

def _fused_decoder_kernel(x_ref, pos_ref, wqk_ref, wv_ref, wfc_ref,
                          w1_ref, b1_ref, w2_ref, b2_ref,
                          pre_ref, stats_ref, *, n_head):
    x = x_ref[0]                                   # (C, L)  f32, channel-major tokens
    C, L = x.shape
    dk = C // n_head

    # q = k = x + pos ; v = x      (pos add baked into the kernel)
    qk_in = x + pos_ref[...]

    # bf16 operands / f32 accumulation for the big projection matmuls.
    qk_bf = qk_in.astype(jnp.bfloat16)
    x_bf = x.astype(jnp.bfloat16)

    # Merged Q/K 1x1-conv projection: (2C, C) @ (C, L) -> (2C, L)   (Wq pre-scaled)
    qkc = jnp.dot(wqk_ref[...], qk_bf, preferred_element_type=jnp.float32)
    # V projection: (C, C) @ (C, L) -> (C, L)
    v = jnp.dot(wv_ref[...], x_bf, preferred_element_type=jnp.float32)

    # ---- multi-head attention, batched over heads (no per-head Python loop) ----
    q3 = qkc[:C, :].reshape(n_head, dk, L)          # (H, dk, L)  f32
    k3 = qkc[C:, :].reshape(n_head, dk, L)          # (H, dk, L)
    v3 = v.reshape(n_head, dk, L)                   # (H, dk, L)

    # s[h, i, j] = sum_d q3[h, d, i] * k3[h, d, j]      -> (H, L, L)
    s = jax.lax.dot_general(
        q3, k3, (((1,), (1,)), ((0,), (0,))),
        preferred_element_type=jnp.float32)
    s = s - jnp.max(s, axis=-1, keepdims=True)          # stable softmax
    p = jnp.exp(s)
    # normalisation via EUP reciprocal instead of a VALU divide
    p = p * pl.reciprocal(jnp.sum(p, axis=-1, keepdims=True), approx=True)

    # o[h, d, i] = sum_j v3[h, d, j] * p[h, i, j]       -> (H, dk, L)
    o3 = jax.lax.dot_general(
        v3, p, (((2,), (2,)), ((0,), (0,))),
        preferred_element_type=jnp.float32)
    attn = o3.reshape(C, L)                              # head merge: free reshape

    # attention output projection (1x1 conv, no bias)
    out = jnp.dot(wfc_ref[...], attn.astype(jnp.bfloat16),
                  preferred_element_type=jnp.float32)

    # FFN: out + linear2(relu(linear1(out)))
    h1 = jnp.dot(w1_ref[...], out.astype(jnp.bfloat16),
                 preferred_element_type=jnp.float32) + b1_ref[...]
    h1 = jnp.maximum(h1, 0.0)
    y = jnp.dot(w2_ref[...], h1.astype(jnp.bfloat16),
                preferred_element_type=jnp.float32) + b2_ref[...]
    pre = out + y                                         # (C, L) pre-BatchNorm
    pre_ref[0] = pre.astype(pre_ref.dtype)

    # per-batch partial BN statistics, LANE-DENSE layout (2, C):
    # row 0 = sum over tokens, row 1 = sum of squares, channel on the lane dim.
    # Computed with tiny MXU dots against a ones row (avoids sublane->lane relayout).
    ones_row = jnp.ones((1, L), jnp.float32)
    s0 = jax.lax.dot_general(ones_row, pre, (((1,), (1,)), ((), ())),
                             preferred_element_type=jnp.float32)        # (1, C)
    s1 = jax.lax.dot_general(ones_row, pre * pre, (((1,), (1,)), ((), ())),
                             preferred_element_type=jnp.float32)        # (1, C)
    stats_ref[0] = jnp.concatenate([s0, s1], axis=0).astype(stats_ref.dtype)


# ----------------------------------------------------------------------------
# Kernel 2: BatchNorm apply — a single FMA, written in place over `pre`
# ----------------------------------------------------------------------------

def _bn_apply_kernel(x_ref, a_ref, c_ref, o_ref):
    # a = gamma * rsqrt(var + eps), c = beta - mean * a   (precomputed outside)
    o_ref[0] = (x_ref[0] * a_ref[...] + c_ref[...]).astype(o_ref.dtype)


# ----------------------------------------------------------------------------
# Plain-JAX glue: positional encoding (input-independent, cached) & params
# ----------------------------------------------------------------------------

def pos_en_sine_tokens(h, w, num_pos_feats, temperature=10000.0):
    """DETR-style sine positional encoding, channel-major: (2*num_pos_feats, h*w)."""
    scale = 2.0 * math.pi
    not_mask = jnp.ones((1, h, w), jnp.float32)
    y_embed = jnp.cumsum(not_mask, axis=1)
    x_embed = jnp.cumsum(not_mask, axis=2)
    eps = 1e-6
    y_embed = y_embed / (y_embed[:, -1:, :] + eps) * scale
    x_embed = x_embed / (x_embed[:, :, -1:] + eps) * scale

    dim_t = jnp.arange(num_pos_feats, dtype=jnp.float32)
    dim_t = temperature ** (2.0 * jnp.floor(dim_t / 2.0) / num_pos_feats)

    pos_x = x_embed[:, :, :, None] / dim_t
    pos_y = y_embed[:, :, :, None] / dim_t
    pos_x = jnp.stack(
        (jnp.sin(pos_x[:, :, :, 0::2]), jnp.cos(pos_x[:, :, :, 1::2])), axis=4
    ).reshape(1, h, w, num_pos_feats)
    pos_y = jnp.stack(
        (jnp.sin(pos_y[:, :, :, 0::2]), jnp.cos(pos_y[:, :, :, 1::2])), axis=4
    ).reshape(1, h, w, num_pos_feats)
    pos = jnp.concatenate((pos_y, pos_x), axis=3).transpose(0, 3, 1, 2)  # (1, C, h, w)
    return pos[0].reshape(2 * num_pos_feats, h * w)                      # (C, L)


def init_params(key, feat_dim):
    """Deterministic synthetic parameters, stored (C_out, C_in) like conv weights."""
    ks = jax.random.split(key, 8)
    s = 1.0 / math.sqrt(feat_dim)
    C = feat_dim
    return {
        "w_qs": jax.random.normal(ks[0], (C, C), jnp.float32) * s,
        "w_ks": jax.random.normal(ks[1], (C, C), jnp.float32) * s,
        "w_vs": jax.random.normal(ks[2], (C, C), jnp.float32) * s,
        "w_fc": jax.random.normal(ks[3], (C, C), jnp.float32) * s,
        "w1": jax.random.normal(ks[4], (C, C), jnp.float32) * s,
        "b1": jax.random.normal(ks[5], (C,), jnp.float32) * s,
        "w2": jax.random.normal(ks[6], (C, C), jnp.float32) * s,
        "b2": jax.random.normal(ks[7], (C,), jnp.float32) * s,
        "gamma": jnp.ones((C,), jnp.float32),     # BatchNorm2d default init
        "beta": jnp.zeros((C,), jnp.float32),
    }


# ----------------------------------------------------------------------------
# Full forward pass (2 pallas_calls, no wrapper-side transposes)
# ----------------------------------------------------------------------------

def transformer_decoder_unit(x, params, pos_cl, *, n_head=4):
    B, C, H, W = x.shape
    L = H * W
    dk = C // n_head
    scale = 1.0 / math.sqrt(dk)

    x3 = x.reshape(B, C, L)                                   # free (contiguous)
    # Fold the 1/sqrt(dk) scale into the Wq rows; cast weights to bf16 once.
    wqk = jnp.concatenate([params["w_qs"] * scale, params["w_ks"]],
                          axis=0).astype(jnp.bfloat16)        # (2C, C)
    wv = params["w_vs"].astype(jnp.bfloat16)
    wfc = params["w_fc"].astype(jnp.bfloat16)
    w1 = params["w1"].astype(jnp.bfloat16)
    w2 = params["w2"].astype(jnp.bfloat16)

    compiler_params = pltpu.CompilerParams(
        dimension_semantics=("parallel",),
        vmem_limit_bytes=_VMEM_LIMIT,
    )

    pre, stats = pl.pallas_call(
        partial(_fused_decoder_kernel, n_head=n_head),
        out_shape=(
            jax.ShapeDtypeStruct((B, C, L), x.dtype),         # pre-BN activations
            jax.ShapeDtypeStruct((B, 2, C), jnp.float32),     # lane-dense [sum; sumsq]
        ),
        grid_spec=pltpu.PrefetchScalarGridSpec(
            num_scalar_prefetch=0,
            grid=(B,),
            in_specs=[
                pl.BlockSpec((1, C, L), lambda b: (b, 0, 0)),     # x tokens (batch b)
                pl.BlockSpec((C, L), lambda b: (0, 0)),           # positional encoding
                pl.BlockSpec((2 * C, C), lambda b: (0, 0)),       # merged Wq|Wk (bf16)
                pl.BlockSpec((C, C), lambda b: (0, 0)),           # Wv (bf16)
                pl.BlockSpec((C, C), lambda b: (0, 0)),           # Wfc (bf16)
                pl.BlockSpec((C, C), lambda b: (0, 0)),           # W1 (bf16)
                pl.BlockSpec((C, 1), lambda b: (0, 0)),           # b1
                pl.BlockSpec((C, C), lambda b: (0, 0)),           # W2 (bf16)
                pl.BlockSpec((C, 1), lambda b: (0, 0)),           # b2
            ],
            out_specs=(
                pl.BlockSpec((1, C, L), lambda b: (b, 0, 0)),
                pl.BlockSpec((1, 2, C), lambda b: (b, 0, 0)),
            ),
        ),
        compiler_params=compiler_params,
    )(x3, pos_cl, wqk, wv, wfc,
      w1, params["b1"].reshape(C, 1),
      w2, params["b2"].reshape(C, 1))

    # Tiny BN-stats reduction + rsqrt once, in plain JAX (training-mode batch stats).
    n = jnp.float32(B * L)
    tot = jnp.sum(stats, axis=0)                              # (2, C)
    mean = tot[0] / n
    var = tot[1] / n - mean * mean                            # biased variance
    a = params["gamma"] * jax.lax.rsqrt(var + 1e-5)           # (C,)
    c = params["beta"] - mean * a                             # (C,)

    out = pl.pallas_call(
        _bn_apply_kernel,
        out_shape=jax.ShapeDtypeStruct((B, C, L), x.dtype),
        grid_spec=pltpu.PrefetchScalarGridSpec(
            num_scalar_prefetch=0,
            grid=(B,),
            in_specs=[
                pl.BlockSpec((1, C, L), lambda b: (b, 0, 0)),     # pre-BN (batch b)
                pl.BlockSpec((C, 1), lambda b: (0, 0)),           # a = gamma*rsqrt(var+eps)
                pl.BlockSpec((C, 1), lambda b: (0, 0)),           # c = beta - mean*a
            ],
            out_specs=pl.BlockSpec((1, C, L), lambda b: (b, 0, 0)),
        ),
        input_output_aliases={0: 0},                              # normalise in place
        compiler_params=compiler_params,
    )(pre, a.reshape(C, 1), c.reshape(C, 1))

    return out.reshape(B, C, H, W)


# ----------------------------------------------------------------------------
# Pure-JAX reference (f32 everywhere) for a tolerance check
# ----------------------------------------------------------------------------

def reference_forward(x, params, pos_cl, *, n_head=4):
    B, C, H, W = x.shape
    L = H * W
    dk = C // n_head
    xt = x.reshape(B, C, L)
    qk_in = xt + pos_cl[None]
    q = jnp.einsum("oc,bcl->bol", params["w_qs"], qk_in)
    k = jnp.einsum("oc,bcl->bol", params["w_ks"], qk_in)
    v = jnp.einsum("oc,bcl->bol", params["w_vs"], xt)
    qh = q.reshape(B, n_head, dk, L)
    kh = k.reshape(B, n_head, dk, L)
    vh = v.reshape(B, n_head, dk, L)
    s = jnp.einsum("bhdi,bhdj->bhij", qh, kh) / math.sqrt(dk)
    p = jax.nn.softmax(s, axis=-1)
    o = jnp.einsum("bhij,bhdj->bhdi", p, vh).reshape(B, C, L)
    out = jnp.einsum("oc,bcl->bol", params["w_fc"], o)
    h1 = jnp.maximum(
        jnp.einsum("oc,bcl->bol", params["w1"], out) + params["b1"][None, :, None], 0.0)
    y2 = jnp.einsum("oc,bcl->bol", params["w2"], h1) + params["b2"][None, :, None]
    pre = out + y2
    mean = jnp.mean(pre, axis=(0, 2), keepdims=True)
    var = jnp.mean(pre * pre, axis=(0, 2), keepdims=True) - mean * mean
    outn = (pre - mean) * jax.lax.rsqrt(var + 1e-5) * params["gamma"][None, :, None] \
        + params["beta"][None, :, None]
    return outn.reshape(B, C, H, W)


if __name__ == "__main__":
    key = jax.random.PRNGKey(0)
    k_x, k_p = jax.random.split(key)

    B, C, H, W = 2, 32, 8, 8             # feat_dim=32, n_head=4 -> d_k=d_v=8
    n_head = 4
    x = jax.random.normal(k_x, (B, C, H, W), jnp.float32)
    params = init_params(k_p, C)

    # Positional encoding depends only on (H, W, C): computed once, cached,
    # and passed into the jitted forward (added to the tokens inside the kernel).
    pos_cl = pos_en_sine_tokens(H, W, C // 2)            # (C, H*W)

    fwd = jax.jit(partial(transformer_decoder_unit, n_head=n_head))
    y = fwd(x, params, pos_cl)
    jax.block_until_ready(y)
    assert y.shape == (B, C, H, W) and y.dtype == jnp.float32

    # Loose tolerance: kernel uses bf16 MXU operands + approx EUP reciprocal.
    y_ref = reference_forward(x, params, pos_cl, n_head=n_head)
    max_err = float(jnp.max(jnp.abs(y - y_ref)))
    assert max_err < 0.25, f"max abs error vs f32 reference too large: {max_err}"
    print("KERNEL_OK")
</pallas_src>

<mosaic_0001>
module attributes {stable_mosaic.version = 11 : i64} {
  func.func @_bn_apply_kernel(%arg0: i32, %arg1: memref<1x32x64xf32, #tpu.memory_space<vmem>>, %arg2: memref<32x1xf32, #tpu.memory_space<vmem>>, %arg3: memref<32x1xf32, #tpu.memory_space<vmem>>, %arg4: memref<1x32x64xf32, #tpu.memory_space<vmem>>) attributes {dimension_semantics = [#tpu.dimension_semantics<parallel>], iteration_bounds = array<i64: 2>, scalar_prefetch = 0 : i64, scratch_operands = 0 : i64, tpu.core_type = #tpu.core_type<tc>, window_params = [{transform_indices = @transform_0, window_bounds = array<i64: 1, 32, 64>}, {pipeline_mode = #tpu.pipeline_mode<synchronous>, transform_indices = @transform_1, window_bounds = array<i64: 32, 1>}, {pipeline_mode = #tpu.pipeline_mode<synchronous>, transform_indices = @transform_2, window_bounds = array<i64: 32, 1>}, {transform_indices = @transform_3, window_bounds = array<i64: 1, 32, 64>}]} {
    %c0 = arith.constant 0 : index
    %c0_0 = arith.constant 0 : index
    %c0_1 = arith.constant 0 : index
    %0 = vector.load %arg1[%c0, %c0_0, %c0_1] : memref<1x32x64xf32, #tpu.memory_space<vmem>>, vector<1x32x64xf32>
    %1 = vector.shape_cast %0 : vector<1x32x64xf32> to vector<32x64xf32>
    %c0_2 = arith.constant 0 : index
    %c0_3 = arith.constant 0 : index
    %2 = vector.load %arg2[%c0_2, %c0_3] : memref<32x1xf32, #tpu.memory_space<vmem>>, vector<32x1xf32>
    %3 = vector.broadcast %2 : vector<32x1xf32> to vector<32x64xf32>
    %4 = arith.mulf %1, %3 : vector<32x64xf32>
    %c0_4 = arith.constant 0 : index
    %c0_5 = arith.constant 0 : index
    %5 = vector.load %arg3[%c0_4, %c0_5] : memref<32x1xf32, #tpu.memory_space<vmem>>, vector<32x1xf32>
    %6 = vector.broadcast %5 : vector<32x1xf32> to vector<32x64xf32>
    %7 = arith.addf %4, %6 : vector<32x64xf32>
    %c0_6 = arith.constant 0 : index
    %c0_7 = arith.constant 0 : index
    %c0_8 = arith.constant 0 : index
    %8 = vector.load %arg4[%c0_6, %c0_7, %c0_8] : memref<1x32x64xf32, #tpu.memory_space<vmem>>, vector<1x32x64xf32>
    %9 = vector.shape_cast %8 : vector<1x32x64xf32> to vector<32x64xf32>
    %10 = vector.shape_cast %7 : vector<32x64xf32> to vector<1x32x64xf32>
    tpu.vector_store %arg4[%c0_6, %c0_7, %c0_8], %10 {strides = array<i32>} : memref<1x32x64xf32, #tpu.memory_space<vmem>>, vector<1x32x64xf32>,
    return
  }
  func.func @transform_0(%arg0: i32) -> (i32, i32, i32) {
    %c0_i32 = arith.constant 0 : i32
    %c0_i32_0 = arith.constant 0 : i32
    %c0_i32_1 = arith.constant 0 : i32
    return %arg0, %c0_i32, %c0_i32_0 : i32, i32, i32
  }
  func.func @transform_1(%arg0: i32) -> (i32, i32) {
    %c0_i32 = arith.constant 0 : i32
    %c0_i32_0 = arith.constant 0 : i32
    %c0_i32_1 = arith.constant 0 : i32
    return %c0_i32, %c0_i32_0 : i32, i32
  }
  func.func @transform_2(%arg0: i32) -> (i32, i32) {
    %c0_i32 = arith.constant 0 : i32
    %c0_i32_0 = arith.constant 0 : i32
    %c0_i32_1 = arith.constant 0 : i32
    return %c0_i32, %c0_i32_0 : i32, i32
  }
  func.func @transform_3(%arg0: i32) -> (i32, i32, i32) {
    %c0_i32 = arith.constant 0 : i32
    %c0_i32_0 = arith.constant 0 : i32
    %c0_i32_1 = arith.constant 0 : i32
    return %arg0, %c0_i32, %c0_i32_0 : i32, i32, i32
  }
}

module attributes {stable_mosaic.version = 11 : i64} {
  func.func @_fused_decoder_kernel(%arg0: i32, %arg1: memref<1x32x64xf32, #tpu.memory_space<vmem>>, %arg2: memref<32x64xf32, #tpu.memory_space<vmem>>, %arg3: memref<64x32xbf16, #tpu.memory_space<vmem>>, %arg4: memref<32x32xbf16, #tpu.memory_space<vmem>>, %arg5: memref<32x32xbf16, #tpu.memory_space<vmem>>, %arg6: memref<32x32xbf16, #tpu.memory_space<vmem>>, %arg7: memref<32x1xf32, #tpu.memory_space<vmem>>, %arg8: memref<32x32xbf16, #tpu.memory_space<vmem>>, %arg9: memref<32x1xf32, #tpu.memory_space<vmem>>, %arg10: memref<1x32x64xf32, #tpu.memory_space<vmem>>, %arg11: memref<1x2x32xf32, #tpu.memory_space<vmem>>) attributes {dimension_semantics = [#tpu.dimension_semantics<parallel>], iteration_bounds = array<i64: 2>, scalar_prefetch = 0 : i64, scratch_operands = 0 : i64, tpu.core_type = #tpu.core_type<tc>, window_params = [{transform_indices = @transform_0, window_bounds = array<i64: 1, 32, 64>}, {pipeline_mode = #tpu.pipeline_mode<synchronous>, transform_indices = @transform_1, window_bounds = array<i64: 32, 64>}, {pipeline_mode = #tpu.pipeline_mode<synchronous>, transform_indices = @transform_2, window_bounds = array<i64: 64, 32>}, {pipeline_mode = #tpu.pipeline_mode<synchronous>, transform_indices = @transform_3, window_bounds = array<i64: 32, 32>}, {pipeline_mode = #tpu.pipeline_mode<synchronous>, transform_indices = @transform_4, window_bounds = array<i64: 32, 32>}, {pipeline_mode = #tpu.pipeline_mode<synchronous>, transform_indices = @transform_5, window_bounds = array<i64: 32, 32>}, {pipeline_mode = #tpu.pipeline_mode<synchronous>, transform_indices = @transform_6, window_bounds = array<i64: 32, 1>}, {pipeline_mode = #tpu.pipeline_mode<synchronous>, transform_indices = @transform_7, window_bounds = array<i64: 32, 32>}, {pipeline_mode = #tpu.pipeline_mode<synchronous>, transform_indices = @transform_8, window_bounds = array<i64: 32, 1>}, {transform_indices = @transform_9, window_bounds = array<i64: 1, 32, 64>}, {transform_indices = @transform_10, window_bounds = array<i64: 1, 2, 32>}]} {
    %c0 = arith.constant 0 : index
    %c0_0 = arith.constant 0 : index
    %c0_1 = arith.constant 0 : index
    %0 = vector.load %arg1[%c0, %c0_0, %c0_1] : memref<1x32x64xf32, #tpu.memory_space<vmem>>, vector<1x32x64xf32>
    %1 = vector.shape_cast %0 : vector<1x32x64xf32> to vector<32x64xf32>
    %c0_2 = arith.constant 0 : index
    %c0_3 = arith.constant 0 : index
    %2 = vector.load %arg2[%c0_2, %c0_3] : memref<32x64xf32, #tpu.memory_space<vmem>>, vector<32x64xf32>
    %3 = arith.addf %1, %2 : vector<32x64xf32>
    %4 = arith.truncf %3 : vector<32x64xf32> to vector<32x64xbf16>
    %5 = arith.truncf %1 : vector<32x64xf32> to vector<32x64xbf16>
    %c0_4 = arith.constant 0 : index
    %c0_5 = arith.constant 0 : index
    %6 = vector.load %arg3[%c0_4, %c0_5] : memref<64x32xbf16, #tpu.memory_space<vmem>>, vector<64x32xbf16>
    %cst = arith.constant dense<0.000000e+00> : vector<64x64xf32>
    %7 = tpu.matmul %6, %4, %cst {dimension_numbers = #tpu.dot_dimension_numbers<[1], [0], [0], [1], [0, 0, 1, 1], [], []>} : vector<64x32xbf16>, vector<32x64xbf16>, vector<64x64xf32> -> vector<64x64xf32>
    %c0_6 = arith.constant 0 : index
    %c0_7 = arith.constant 0 : index
    %8 = vector.load %arg4[%c0_6, %c0_7] : memref<32x32xbf16, #tpu.memory_space<vmem>>, vector<32x32xbf16>
    %cst_8 = arith.constant dense<0.000000e+00> : vector<32x64xf32>
    %9 = tpu.matmul %8, %5, %cst_8 {dimension_numbers = #tpu.dot_dimension_numbers<[1], [0], [0], [1], [0, 0, 1, 1], [], []>} : vector<32x32xbf16>, vector<32x64xbf16>, vector<32x64xf32> -> vector<32x64xf32>
    %10 = vector.extract_strided_slice %7 {offsets = [0, 0], sizes = [32, 64], strides = [1, 1]} : vector<64x64xf32> to vector<32x64xf32>
    %11 = vector.shape_cast %10 : vector<32x64xf32> to vector<4x8x64xf32>
    %12 = vector.extract_strided_slice %7 {offsets = [32, 0], sizes = [32, 64], strides = [1, 1]} : vector<64x64xf32> to vector<32x64xf32>
    %13 = vector.shape_cast %12 : vector<32x64xf32> to vector<4x8x64xf32>
    %14 = vector.shape_cast %9 : vector<32x64xf32> to vector<4x8x64xf32>
    %cst_9 = arith.constant dense<0.000000e+00> : vector<4x64x64xf32>
    %15 = tpu.matmul %11, %13, %cst_9 {dimension_numbers = #tpu.dot_dimension_numbers<[1], [1], [2], [2], [0, 0, 0, 2, 1, 2], [0], [0]>} : vector<4x8x64xf32>, vector<4x8x64xf32>, vector<4x64x64xf32> -> vector<4x64x64xf32>
    %cst_10 = arith.constant dense<0xFF800000> : vector<4x64xf32>
    %16 = vector.multi_reduction <maximumf>, %15, %cst_10 [2] : vector<4x64x64xf32> to vector<4x64xf32>
    %17 = vector.shape_cast %16 : vector<4x64xf32> to vector<4x64x1xf32>
    %18 = vector.broadcast %17 : vector<4x64x1xf32> to vector<4x64x64xf32>
    %19 = arith.subf %15, %18 : vector<4x64x64xf32>
    %20 = math.exp %19 : vector<4x64x64xf32>
    %cst_11 = arith.constant dense<0.000000e+00> : vector<4x64xf32>
    %21 = vector.multi_reduction <add>, %20, %cst_11 [2] : vector<4x64x64xf32> to vector<4x64xf32>
    %22 = vector.shape_cast %21 : vector<4x64xf32> to vector<4x64x1xf32>
    %23 = tpu.reciprocal %22 {approx = true} : vector<4x64x1xf32> -> vector<4x64x1xf32>
    %24 = vector.broadcast %23 : vector<4x64x1xf32> to vector<4x64x64xf32>
    %25 = arith.mulf %20, %24 : vector<4x64x64xf32>
    %cst_12 = arith.constant dense<0.000000e+00> : vector<4x8x64xf32>
    %26 = tpu.matmul %14, %25, %cst_12 {dimension_numbers = #tpu.dot_dimension_numbers<[2], [2], [1], [1], [0, 0, 0, 1, 1, 1], [0], [0]>} : vector<4x8x64xf32>, vector<4x64x64xf32>, vector<4x8x64xf32> -> vector<4x8x64xf32>
    %27 = vector.shape_cast %26 : vector<4x8x64xf32> to vector<32x64xf32>
    %c0_13 = arith.constant 0 : index
    %c0_14 = arith.constant 0 : index
    %28 = vector.load %arg5[%c0_13, %c0_14] : memref<32x32xbf16, #tpu.memory_space<vmem>>, vector<32x32xbf16>
    %29 = arith.truncf %27 : vector<32x64xf32> to vector<32x64xbf16>
    %cst_15 = arith.constant dense<0.000000e+00> : vector<32x64xf32>
    %30 = tpu.matmul %28, %29, %cst_15 {dimension_numbers = #tpu.dot_dimension_numbers<[1], [0], [0], [1], [0, 0, 1, 1], [], []>} : vector<32x32xbf16>, vector<32x64xbf16>, vector<32x64xf32> -> vector<32x64xf32>
    %c0_16 = arith.constant 0 : index
    %c0_17 = arith.constant 0 : index
    %31 = vector.load %arg6[%c0_16, %c0_17] : memref<32x32xbf16, #tpu.memory_space<vmem>>, vector<32x32xbf16>
    %32 = arith.truncf %30 : vector<32x64xf32> to vector<32x64xbf16>
    %cst_18 = arith.constant dense<0.000000e+00> : vector<32x64xf32>
    %33 = tpu.matmul %31, %32, %cst_18 {dimension_numbers = #tpu.dot_dimension_numbers<[1], [0], [0], [1], [0, 0, 1, 1], [], []>} : vector<32x32xbf16>, vector<32x64xbf16>, vector<32x64xf32> -> vector<32x64xf32>
    %c0_19 = arith.constant 0 : index
    %c0_20 = arith.constant 0 : index
    %34 = vector.load %arg7[%c0_19, %c0_20] : memref<32x1xf32, #tpu.memory_space<vmem>>, vector<32x1xf32>
    %35 = vector.broadcast %34 : vector<32x1xf32> to vector<32x64xf32>
    %36 = arith.addf %33, %35 : vector<32x64xf32>
    %cst_21 = arith.constant 0.000000e+00 : f32
    %37 = vector.broadcast %cst_21 : f32 to vector<32x64xf32>
    %38 = arith.maximumf %36, %37 : vector<32x64xf32>
    %c0_22 = arith.constant 0 : index
    %c0_23 = arith.constant 0 : index
    %39 = vector.load %arg8[%c0_22, %c0_23] : memref<32x32xbf16, #tpu.memory_space<vmem>>, vector<32x32xbf16>
    %40 = arith.truncf %38 : vector<32x64xf32> to vector<32x64xbf16>
    %cst_24 = arith.constant dense<0.000000e+00> : vector<32x64xf32>
    %41 = tpu.matmul %39, %40, %cst_24 {dimension_numbers = #tpu.dot_dimension_numbers<[1], [0], [0], [1], [0, 0, 1, 1], [], []>} : vector<32x32xbf16>, vector<32x64xbf16>, vector<32x64xf32> -> vector<32x64xf32>
    %c0_25 = arith.constant 0 : index
    %c0_26 = arith.constant 0 : index
    %42 = vector.load %arg9[%c0_25, %c0_26] : memref<32x1xf32, #tpu.memory_space<vmem>>, vector<32x1xf32>
    %43 = vector.broadcast %42 : vector<32x1xf32> to vector<32x64xf32>
    %44 = arith.addf %41, %43 : vector<32x64xf32>
    %45 = arith.addf %30, %44 : vector<32x64xf32>
    %c0_27 = arith.constant 0 : index
    %c0_28 = arith.constant 0 : index
    %c0_29 = arith.constant 0 : index
    %46 = vector.load %arg10[%c0_27, %c0_28, %c0_29] : memref<1x32x64xf32, #tpu.memory_space<vmem>>, vector<1x32x64xf32>
    %47 = vector.shape_cast %46 : vector<1x32x64xf32> to vector<32x64xf32>
    %48 = vector.shape_cast %45 : vector<32x64xf32> to vector<1x32x64xf32>
    tpu.vector_store %arg10[%c0_27, %c0_28, %c0_29], %48 {strides = array<i32>} : memref<1x32x64xf32, #tpu.memory_space<vmem>>, vector<1x32x64xf32>,
    %cst_30 = arith.constant 1.000000e+00 : f32
    %49 = vector.broadcast %cst_30 : f32 to vector<1x64xf32>
    %cst_31 = arith.constant dense<0.000000e+00> : vector<1x32xf32>
    %50 = tpu.matmul %49, %45, %cst_31 {dimension_numbers = #tpu.dot_dimension_numbers<[1], [1], [0], [0], [0, 0, 1, 0], [], []>} : vector<1x64xf32>, vector<32x64xf32>, vector<1x32xf32> -> vector<1x32xf32>
    %51 = arith.mulf %45, %45 : vector<32x64xf32>
    %cst_32 = arith.constant dense<0.000000e+00> : vector<1x32xf32>
    %52 = tpu.matmul %49, %51, %cst_32 {dimension_numbers = #tpu.dot_dimension_numbers<[1], [1], [0], [0], [0, 0, 1, 0], [], []>} : vector<1x64xf32>, vector<32x64xf32>, vector<1x32xf32> -> vector<1x32xf32>
    %53 = tpu.concatenate %50, %52 in 0 : vector<1x32xf32>, vector<1x32xf32> -> vector<2x32xf32>
    %c0_33 = arith.constant 0 : index
    %c0_34 = arith.constant 0 : index
    %c0_35 = arith.constant 0 : index
    %54 = vector.load %arg11[%c0_33, %c0_34, %c0_35] : memref<1x2x32xf32, #tpu.memory_space<vmem>>, vector<1x2x32xf32>
    %55 = vector.shape_cast %54 : vector<1x2x32xf32> to vector<2x32xf32>
    %56 = vector.shape_cast %53 : vector<2x32xf32> to vector<1x2x32xf32>
    tpu.vector_store %arg11[%c0_33, %c0_34, %c0_35], %56 {strides = array<i32>} : memref<1x2x32xf32, #tpu.memory_space<vmem>>, vector<1x2x32xf32>,
    return
  }
  func.func @transform_0(%arg0: i32) -> (i32, i32, i32) {
    %c0_i32 = arith.constant 0 : i32
    %c0_i32_0 = arith.constant 0 : i32
    %c0_i32_1 = arith.constant 0 : i32
    return %arg0, %c0_i32, %c0_i32_0 : i32, i32, i32
  }
  func.func @transform_1(%arg0: i32) -> (i32, i32) {
    %c0_i32 = arith.constant 0 : i32
    %c0_i32_0 = arith.constant 0 : i32
    %c0_i32_1 = arith.constant 0 : i32
    return %c0_i32, %c0_i32_0 : i32, i32
  }
  func.func @transform_2(%arg0: i32) -> (i32, i32) {
    %c0_i32 = arith.constant 0 : i32
    %c0_i32_0 = arith.constant 0 : i32
    %c0_i32_1 = arith.constant 0 : i32
    return %c0_i32, %c0_i32_0 : i32, i32
  }
  func.func @transform_3(%arg0: i32) -> (i32, i32) {
    %c0_i32 = arith.constant 0 : i32
    %c0_i32_0 = arith.constant 0 : i32
    %c0_i32_1 = arith.constant 0 : i32
    return %c0_i32, %c0_i32_0 : i32, i32
  }
  func.func @transform_4(%arg0: i32) -> (i32, i32) {
    %c0_i32 = arith.constant 0 : i32
    %c0_i32_0 = arith.constant 0 : i32
    %c0_i32_1 = arith.constant 0 : i32
    return %c0_i32, %c0_i32_0 : i32, i32
  }
  func.func @transform_5(%arg0: i32) -> (i32, i32) {
    %c0_i32 = arith.constant 0 : i32
    %c0_i32_0 = arith.constant 0 : i32
    %c0_i32_1 = arith.constant 0 : i32
    return %c0_i32, %c0_i32_0 : i32, i32
  }
  func.func @transform_6(%arg0: i32) -> (i32, i32) {
    %c0_i32 = arith.constant 0 : i32
    %c0_i32_0 = arith.constant 0 : i32
    %c0_i32_1 = arith.constant 0 : i32
    return %c0_i32, %c0_i32_0 : i32, i32
  }
  func.func @transform_7(%arg0: i32) -> (i32, i32) {
    %c0_i32 = arith.constant 0 : i32
    %c0_i32_0 = arith.constant 0 : i32
    %c0_i32_1 = arith.constant 0 : i32
    return %c0_i32, %c0_i32_0 : i32, i32
  }
  func.func @transform_8(%arg0: i32) -> (i32, i32) {
    %c0_i32 = arith.constant 0 : i32
    %c0_i32_0 = arith.constant 0 : i32
    %c0_i32_1 = arith.constant 0 : i32
    return %c0_i32, %c0_i32_0 : i32, i32
  }
  func.func @transform_9(%arg0: i32) -> (i32, i32, i32) {
    %c0_i32 = arith.constant 0 : i32
    %c0_i32_0 = arith.constant 0 : i32
    %c0_i32_1 = arith.constant 0 : i32
    return %arg0, %c0_i32, %c0_i32_0 : i32, i32, i32
  }
  func.func @transform_10(%arg0: i32) -> (i32, i32, i32) {
    %c0_i32 = arith.constant 0 : i32
    %c0_i32_0 = arith.constant 0 : i32
    %c0_i32_1 = arith.constant 0 : i32
    return %arg0, %c0_i32, %c0_i32_0 : i32, i32, i32
  }
}

</mosaic_0001>

<bundles_post_ra>
// kernel: transformer_decoder_unit.3
= control target key start
LH: loop header
LB: loop body
LE: loop exit
PB: predicated region body
PF: predicated region fallthrough
CT: control target
= control target key end

     0   :  { %s345_s12 = smov 0   ;;  %s390_s0 = inlined_call_operand.vmem [shape: f32[2,32,64], index: 0, kind: input, shape index: {}, may-alias: {0,3}]   ;;  %s391_s1 = inlined_call_operand.vmem [shape: f32[32,1], index: 1, kind: input, shape index: {}]   ;;  %s392_s2 = inlined_call_operand.vmem [shape: f32[32,1], index: 2, kind: input, shape index: {}]   ;;  %s393_s3 = inlined_call_operand.vmem [shape: f32[2,32,64], index: 3, kind: output, shape index: {}, may-alias: {0,3}]  }
   0x1 LB: > { %s291_s13 = sadd.s32 4294967295, %s322_s12   ;;  %p295_p0 = scmp.ge.s32.totalorder %s322_s12, 1  ;;  %s322_s12 = sphi %s345_s12, %s13_s12  }
   0x2   : > { %p137_p1 = scmp.lt.s32.totalorder %s322_s12, 3 }
   0x4   : > { %p138_p2 = pnand %p295_p0, %p137_p1 }
   0x5   : > { %p161_p3 = scmp.lt.s32.totalorder (!%p138_p2), %s291_s13, 1 }
   0x6   : > { %141 = sbr.rel (%p138_p2) target bundleno = 148 (0x94), region = 32 }
   0xb   : > { %v177_v0 = vld [vmem:[%s391_s1 + $0x10] sm:$0xff]  ;;  %v175_v1 = vld [vmem:[%s391_s1] sm:$0xff]  ;;  %v324_v2 = vmov 0   ;;  %v178_v4 = vld [vmem:[%s391_s1 + $0x18] sm:$0xff]  ;;  %s395_s13 = smov (!%p161_p3, %s291_s13), 1  ;;  %vm231_vm0 = vcmask 523264  }
   0xc   : > { %314 = vset.pattern.permute.xlu1 %v324_v2  ;;  %313 = vset.pattern.permute.xlu0 %v324_v2  ;;  %v203_v3 = vld [vmem:[%s392_s2] sm:$0xff]  ;;  %v176_v5 = vld [vmem:[%s391_s1 + $0x8] sm:$0xff]  ;;  %v206_v7 = vld [vmem:[%s392_s2 + $0x18] sm:$0xff]  ;;  %s302_s30 = sshll.u32 %s395_s13, 5 }
   0xd   : > { %191 = vperm.xlu1 %314, %v177_v0   ;;  %181 = vperm.xlu0 %313, %v175_v1   ;;  %v204_v6 = vld [vmem:[%s392_s2 + $0x8] sm:$0xff]  ;;  %v205_v8 = vld [vmem:[%s392_s2 + $0x10] sm:$0xff]  ;;  %s165_s6 = scalar_lea.vmem %s390_s0, %s302_s30  ;;  %s170_s9 = scalar_lea.vmem %s393_s3, %s302_s30 }
   0xe   : > { %315 = vset.pattern.permute.xlu2 %v324_v2  ;;  %v171_v9 = vld [vmem:[%s165_s6] sm:$0xff]  ;;  %v174_v14 = vld [vmem:[%s165_s6 + $0x18] sm:$0xff]  ;;  %v172_v15 = vld [vmem:[%s165_s6 + $0x8] sm:$0xff] }
   0xf   : > { %209 = vperm.xlu2 %315, %v203_v3   ;;  %v173_v17 = vld [vmem:[%s165_s6 + $0x10] sm:$0xff] }
  0x15   : > { %196 = vperm.xlu1 %314, %v178_v4   ;;  %186 = vperm.xlu0 %313, %v176_v5  }
  0x17   : > { %214 = vperm.xlu2 %315, %v204_v6  }
  0x1d   : > { %224 = vperm.xlu1 %314, %v206_v7   ;;  %219 = vperm.xlu0 %313, %v205_v8  }
  0x69   : > { %v210_v10 = vpop.permute.xlu2 %209 }
  0x71   : > { %v215_v21 = vpop.permute.xlu2 %214 }
  0x7f   : > { %v192_v11 = vpop.permute.xlu1 %191  ;;  %v182_v12 = vpop.permute.xlu0 %181 }
  0x80   : > { %v199_v13 = vmul.f32 %v182_v12, %v171_v9  ;;  %v201_v23 = vmul.f32 %v192_v11, %v173_v17 }
  0x82   : > { %v227_v16 = vadd.f32 %v210_v10, %v199_v13 }
  0x84   : > { %232 = vst.msk [vmem:[%s170_s9] sm:$0xff] %vm231_vm0, %v227_v16 }
  0x87   : > { %v197_v18 = vpop.permute.xlu1 %196  ;;  %v187_v19 = vpop.permute.xlu0 %186 }
  0x88   : > { %v200_v20 = vmul.f32 %v187_v19, %v172_v15  ;;  %v202_v24 = vmul.f32 %v197_v18, %v174_v14 }
  0x8a   : > { %v228_v22 = vadd.f32 %v215_v21, %v200_v20 }
  0x8c   : > { %233 = vst.msk [vmem:[%s170_s9 + $0x8] sm:$0xff] %vm231_vm0, %v228_v22 }
  0x8f   : > { %v225_v25 = vpop.permute.xlu1 %224  ;;  %v220_v26 = vpop.permute.xlu0 %219 }
  0x90   : > { %v230_v27 = vadd.f32 %v225_v25, %v202_v24  ;;  %v229_v28 = vadd.f32 %v220_v26, %v201_v23 }
  0x92   : > { %235 = vst.msk [vmem:[%s170_s9 + $0x18] sm:$0xff] %vm231_vm0, %v230_v27 }
  0x93   : > { %234 = vst.msk [vmem:[%s170_s9 + $0x10] sm:$0xff] %vm231_vm0, %v229_v28 }
  0x94 PF: > { %s13_s12 = sadd.s32 1, %s322_s12  }
  0x95   : > { %p10_p4 = scmp.ge.s32.totalorder %s13_s12, 4  }
  0x97   :  { %12 = sbr.rel (!%p10_p4) target bundleno = 1 (0x1), region = 62 }

// kernel: transformer_decoder_unit.2
= control target key start
LH: loop header
LB: loop body
LE: loop exit
PB: predicated region body
PF: predicated region fallthrough
CT: control target
= control target key end

     0   :  { %s2145_s13 = smov 0   ;;  %s2711_s0 = inlined_call_operand.vmem [shape: f32[2,32,64], index: 0, kind: input, shape index: {}]   ;;  %s2712_s1 = inlined_call_operand.vmem [shape: f32[32,64], index: 1, kind: input, shape index: {}]   ;;  %s2713_s2 = inlined_call_operand.vmem [shape: bf16[64,32], index: 2, kind: input, shape index: {}]   ;;  %s2714_s3 = inlined_call_operand.vmem [shape: bf16[32,32], index: 3, kind: input, shape index: {}]   ;;  %s2715_s4 = inlined_call_operand.vmem [shape: bf16[32,32], index: 4, kind: input, shape index: {}]   ;;  %s2716_s5 = inlined_call_operand.vmem [shape: bf16[32,32], index: 5, kind: input, shape index: {}]   ;;  %s2717_s6 = inlined_call_operand.vmem [shape: f32[32,1], index: 6, kind: input, shape index: {}]   ;;  %s2718_s7 = inlined_call_operand.vmem [shape: bf16[32,32], index: 7, kind: input, shape index: {}]   ;;  %s2719_s8 = inlined_call_operand.vmem [shape: f32[32,1], index: 8, kind: input, shape index: {}]   ;;  %s2720_s9 = inlined_call_operand.vmem [shape: f32[2,32,64], index: 9, kind: output, shape index: {0}]   ;;  %s2721_s10 = inlined_call_operand.vmem [shape: f32[2,2,32], index: 10, kind: output, shape index: {1}]  }
   0x1 LB: > { %s1774_s14 = sadd.s32 4294967295, %s2086_s13   ;;  %p1778_p0 = scmp.ge.s32.totalorder %s2086_s13, 1  ;;  %s2086_s13 = sphi %s2145_s13, %s21_s13  }
   0x2   : > { %p315_p1 = scmp.lt.s32.totalorder %s2086_s13, 3 }
   0x4   : > { %p316_p2 = pnand %p1778_p0, %p315_p1 }
   0x5   : > { %p357_p3 = scmp.lt.s32.totalorder (!%p316_p2), %s1774_s14, 1 }
   0x6   : > { %319 = sbr.rel (%p316_p2) target bundleno = 1785 (0x6f9), region = 56 }
   0xb   : > { %s2723_s14 = smov (!%p357_p3, %s1774_s14), 1  ;;  %v378_v0 = vld [vmem:[%s2712_s1 + $0x10] sm:$0xff]  ;;  %v379_v1 = vld [vmem:[%s2712_s1 + $0x18] sm:$0xff]  ;;  %v376_v2 = vld [vmem:[%s2712_s1] sm:$0xff]  ;;  %vm416_vm0 = vcmask 261120   ;;  %vm529_vm1 = vcmask 64512  }
   0xc   : > { %s1924_s15 = sshll.u32 %s2723_s14, 5  ;;  %v377_v3 = vld [vmem:[%s2712_s1 + $0x8] sm:$0xff]  ;;  %v1926_v14 = vld [vmem:[%s2713_s2] sm:$0xff]  ;;  %v1928_v16 = vld [vmem:[%s2713_s2 + $0x10] sm:$0xff]  ;;  %vm886_vm2 = vcmask 523264   ;;  %vm1684_vm3 = vcmask 1040384  }
   0xd   : > { %s361_s24 = scalar_lea.vmem %s2711_s0, %s1924_s15  ;;  %v1927_v15 = vld [vmem:[%s2713_s2 + $0x8] sm:$0xff]  ;;  %v1929_v20 = vld [vmem:[%s2713_s2 + $0x18] sm:$0xff]  ;;  %v1930_v26 = vld [vmem:[%s2714_s3] sm:$0xff]  ;;  %s366_s18 = scalar_lea.vmem %s2720_s9, %s1924_s15  ;;  %vm1686_vm4 = vcmask 254976  }
   0xe   : > { %v374_v4 = vld [vmem:[%s361_s24 + $0x10] sm:$0xff]  ;;  %v375_v5 = vld [vmem:[%s361_s24 + $0x18] sm:$0xff]  ;;  %v372_v6 = vld [vmem:[%s361_s24] sm:$0xff]  ;;  %s1783_s15 = sshll.u32 %s2723_s14, 1 }
   0xf   : > { %v382_v7 = vadd.f32 %v378_v0, %v374_v4  ;;  %v383_v8 = vadd.f32 %v379_v1, %v375_v5  ;;  %v373_v9 = vld [vmem:[%s361_s24 + $0x8] sm:$0xff]  ;;  %v380_v10 = vadd.f32 %v376_v2, %v372_v6  ;;  %v387_v23 = vpack.c.bf16 %v375_v5, %v374_v4  ;;  %s370_s21 = scalar_lea.vmem %s2721_s10, %s1783_s15 }
  0x10   : > { %v381_v11 = vadd.f32 %v377_v3, %v373_v9  ;;  %v386_v25 = vpack.c.bf16 %v373_v9, %v372_v6  ;;  %v1931_v31 = vld [vmem:[%s2714_s3 + $0x8] sm:$0xff] }
  0x11   : > { %v385_v12 = vpack.c.bf16 %v383_v8, %v382_v7  ;;  %484 = vmatpush.bf16.msra.mxu1 %v387_v23 }
  0x12   : > { %v384_v13 = vpack.c.bf16 %v381_v11, %v380_v10 }
  0x13   : > { %435 = vmatpush.bf16.msra.mxu0 %v385_v12 }
  0x15   : > { %485 = vmatpush.bf16.msra.mxu1 %v386_v25 }
  0x17   : > { %436 = vmatpush.bf16.msra.mxu0 %v384_v13 }
  0x18   : > { %1812 = vmatmul.msk.bf16.vlgmr.msra.gmra.mxu1 %vm416_vm0, %v1930_v26 }
  0x1a   : > { %1800 = vmatmul.msk.bf16.vlgmr.msra.gmra.mxu0 %vm416_vm0, %v1926_v14 }
  0x28   : > { %1813 = vmatmul.msk.bf16.gmra.mxu1 %vm416_vm0, %v1931_v31 }
  0x2a   : > { %1801 = vmatmul.msk.bf16.gmra.mxu0 %vm416_vm0, %v1927_v15 }
  0x3a   : > { %1802 = vmatmul.msk.bf16.gmra.mxu0 %vm416_vm0, %v1928_v16 }
  0x4a   : > { %1803 = vmatmul.msk.bf16.gmra.mxu0 %vm416_vm0, %v1929_v20 }
  0x95   : > { %v2238_v3 = vpop.f32.mrf.mxu1 }
  0x97   : > { %v438_v17 = vpop.f32.mrf.mxu0 }
  0x98   : > { %497 = vxpose.xlu0.b32.start.end [1/1] (short) (narrow) %v438_v17, 64 }
  0x9d   : > { %v2241_v5 = vpop.f32.mrf.mxu1 }
  0x9f   : > { %v440_v18 = vpop.f32.mrf.mxu0 }
  0xa5   : > { %v2245_v7 = vpop.f32.mrf.mxu1 }
  0xa7   : > { %v443_v19 = vpop.f32.mrf.mxu0 }
  0xa8   : > { %692 = vxpose.xlu1.b32.start.end [1/1] (short) (narrow) %v443_v19, 64 }
  0xad   : > { %v2250_v10 = vpop.f32.mrf.mxu1 }
  0xaf   : > { %v445_v21 = vpop.f32.mrf.mxu0 }
  0xb7   : > { %v448_v22 = vpop.f32.mrf.mxu0 }
  0xb8   : > { %569 = vmatpush.msra.mxu2 %v448_v22 }
  0xbf   : > { %v450_v28 = vpop.f32.mrf.mxu0 }
  0xc0   : > { %666 = vmatpush.msra.mxu3 %v450_v28 }
  0xc7   : > { %v453_v36 = vpop.f32.mrf.mxu0 }
  0xc8   : > { %763 = vmatpush.msrb.mxu1 %v453_v36 }
  0xcf   : > { %v455_v39 = vpop.f32.mrf.mxu0 }
  0xd0   : > { %860 = vmatpush.msrb.mxu2 %v455_v39 }
  0xd8   : > { %595 = vxpose.xlu0.b32.start.end [1/1] (short) (narrow) %v440_v18, 64 }
  0xe8   : > { %789 = vxpose.xlu1.b32.start.end [1/1] (short) (narrow) %v445_v21, 64 }
 0x13c   : > { %v513_v24 = vpop.trf.xlu0 }
 0x13d   : > { %1814 = vmatmul.msk.f32.vlgmr.msra.gmra.mxu2 %vm529_vm1, %v513_v24 }
 0x144   : > { %v514_v27 = vpop.trf.xlu0 }
 0x145   : > { %1815 = vmatmul.msk.f32.gmra.mxu2 %vm529_vm1, %v514_v27 }
 0x14c   : > { %v515_v29 = vpop.trf.xlu0  ;;  %v708_v30 = vpop.trf.xlu1 }
 0x14d   : > { %1816 = vmatmul.msk.f32.gmra.mxu2 %vm529_vm1, %v515_v29  ;;  %1830 = vmatmul.msk.f32.vlgmr.msrb.gmra.mxu1 %vm529_vm1, %v708_v30 }
 0x154   : > { %v516_v32 = vpop.trf.xlu0  ;;  %v709_v33 = vpop.trf.xlu1 }
 0x155   : > { %1817 = vmatmul.msk.f32.gmra.mxu2 %vm529_vm1, %v516_v32  ;;  %1831 = vmatmul.msk.f32.gmra.mxu1 %vm529_vm1, %v709_v33 }
 0x15c   : > { %v517_v34 = vpop.trf.xlu0  ;;  %v710_v35 = vpop.trf.xlu1 }
 0x15d   : > { %1818 = vmatmul.msk.f32.gmra.mxu2 %vm529_vm1, %v517_v34  ;;  %1832 = vmatmul.msk.f32.gmra.mxu1 %vm529_vm1, %v710_v35 }
 0x164   : > { %v518_v37 = vpop.trf.xlu0  ;;  %v711_v38 = vpop.trf.xlu1 }
 0x165   : > { %1819 = vmatmul.msk.f32.gmra.mxu2 %vm529_vm1, %v518_v37  ;;  %1833 = vmatmul.msk.f32.gmra.mxu1 %vm529_vm1, %v711_v38 }
 0x16c   : > { %v519_v40 = vpop.trf.xlu0  ;;  %v712_v41 = vpop.trf.xlu1 }
 0x16d   : > { %1820 = vmatmul.msk.f32.gmra.mxu2 %vm529_vm1, %v519_v40  ;;  %1834 = vmatmul.msk.f32.gmra.mxu1 %vm529_vm1, %v712_v41 }
 0x174   : > { %v520_v42 = vpop.trf.xlu0  ;;  %v713_v43 = vpop.trf.xlu1 }
 0x175   : > { %1821 = vmatmul.msk.f32.gmra.mxu2 %vm529_vm1, %v520_v42  ;;  %1835 = vmatmul.msk.f32.gmra.mxu1 %vm529_vm1, %v713_v43 }
 0x17c   : > { %v611_v44 = vpop.trf.xlu0  ;;  %v714_v45 = vpop.trf.xlu1 }
 0x17d   : > { %1822 = vmatmul.msk.f32.vlgmr.msra.gmra.mxu3 %vm529_vm1, %v611_v44  ;;  %1836 = vmatmul.msk.f32.gmra.mxu1 %vm529_vm1, %v714_v45 }
 0x184   : > { %v715_v46 = vpop.trf.xlu1  ;;  %v612_v47 = vpop.trf.xlu0 }
 0x185   : > { %1823 = vmatmul.msk.f32.gmra.mxu3 %vm529_vm1, %v612_v47  ;;  %1837 = vmatmul.msk.f32.gmra.mxu1 %vm529_vm1, %v715_v46 }
 0x18c   : > { %v805_v48 = vpop.trf.xlu1  ;;  %v613_v49 = vpop.trf.xlu0 }
 0x18d   : > { %1838 = vmatmul.msk.f32.vlgmr.msrb.gmra.mxu2 %vm529_vm1, %v805_v48  ;;  %1824 = vmatmul.msk.f32.gmra.mxu3 %vm529_vm1, %v613_v49 }
 0x194   : > { %v806_v50 = vpop.trf.xlu1  ;;  %v614_v51 = vpop.trf.xlu0 }
 0x195   : > { %1839 = vmatmul.msk.f32.gmra.mxu2 %vm529_vm1, %v806_v50  ;;  %1825 = vmatmul.msk.f32.gmra.mxu3 %vm529_vm1, %v614_v51 }
 0x19c   : > { %v807_v52 = vpop.trf.xlu1  ;;  %v615_v55 = vpop.trf.xlu0 }
 0x19d   : > { %1840 = vmatmul.msk.f32.gmra.mxu2 %vm529_vm1, %v807_v52  ;;  %1826 = vmatmul.msk.f32.gmra.mxu3 %vm529_vm1, %v615_v55 }
 0x1a4   : > { %v808_v53 = vpop.trf.xlu1  ;;  %v616_v62 = vpop.trf.xlu0 }
 0x1a5   : > { %1841 = vmatmul.msk.f32.gmra.mxu2 %vm529_vm1, %v808_v53  ;;  %1827 = vmatmul.msk.f32.gmra.mxu3 %vm529_vm1, %v616_v62 }
 0x1ac   : > { %v809_v54 = vpop.trf.xlu1  ;;  %v617_v4 = vpop.trf.xlu0 }
 0x1ad   : > { %1842 = vmatmul.msk.f32.gmra.mxu2 %vm529_vm1, %v809_v54  ;;  %1828 = vmatmul.msk.f32.gmra.mxu3 %vm529_vm1, %v617_v4 }
 0x1b4   : > { %v810_v56 = vpop.trf.xlu1  ;;  %v618_v8 = vpop.trf.xlu0 }
 0x1b5   : > { %1843 = vmatmul.msk.f32.gmra.mxu2 %vm529_vm1, %v810_v56  ;;  %1829 = vmatmul.msk.f32.gmra.mxu3 %vm529_vm1, %v618_v8 }
 0x1bc   : > { %v811_v57 = vpop.trf.xlu1 }
 0x1bd   : > { %1844 = vmatmul.msk.f32.gmra.mxu2 %vm529_vm1, %v811_v57 }
 0x1c0   : > { %v2225_v58 = vpop.f32.mrf.mxu2 }
 0x1c1   : > { %v887_v59 = vsel %vm886_vm2, %v2225_v58, -inf }
 0x1c2   : > { %888 = vmax.xlane.f32.xlu2 %v887_v59 }
 0x1c4   : > { %v812_v60 = vpop.trf.xlu1 }
 0x1c5   : > { %1845 = vmatmul.msk.f32.gmra.mxu2 %vm529_vm1, %v812_v60 }
 0x1c8   : > { %v2230_v61 = vpop.f32.mrf.mxu2 }
 0x1c9   : > { %v890_v63 = vsel %vm886_vm2, %v2230_v61, -inf }
 0x1ca   : > { %891 = vmax.xlane.f32.xlu2 %v890_v63  ;;  %v2258_v14 = vpop.f32.mrf.mxu1 }
 0x1cb   : > { %v935_v15 = vsel %vm886_vm2, %v2258_v14, -inf }
 0x1d0   : > { %v2235_v0 = vpop.f32.mrf.mxu2 }
 0x1d1   : > { %v893_v18 = vsel %vm886_vm2, %v2235_v0, -inf }
 0x1d2   : > { %v2276_v23 = vpop.f32.mrf.mxu1 }
 0x1d3   : > { %v938_v24 = vsel %vm886_vm2, %v2276_v23, -inf }
 0x1d8   : > { %v580_v1 = vpop.f32.mrf.mxu2 }
 0x1d9   : > { %v896_v2 = vsel %vm886_vm2, %v580_v1, -inf }
 0x1da   : > { %897 = vmax.xlane.f32.xlu1 %v896_v2  ;;  %v2288_v29 = vpop.f32.mrf.mxu1 }
 0x1db   : > { %v941_v30 = vsel %vm886_vm2, %v2288_v29, -inf }
 0x1e0   : > { %v2243_v6 = vpop.f32.mrf.mxu2 }
 0x1e1   : > { %v899_v33 = vsel %vm886_vm2, %v2243_v6, -inf }
 0x1e2   : > { %v2304_v37 = vpop.f32.mrf.mxu1 }
 0x1e3   : > { %v944_v38 = vsel %vm886_vm2, %v2304_v37, -inf }
 0x1e8   : > { %v2248_v9 = vpop.f32.mrf.mxu2 }
 0x1e9   : > { %v902_v44 = vsel %vm886_vm2, %v2248_v9, -inf }
 0x1ea   : > { %v2322_v49 = vpop.f32.mrf.mxu1 }
 0x1eb   : > { %v947_v50 = vsel %vm886_vm2, %v2322_v49, -inf }
 0x1f0   : > { %v2252_v11 = vpop.f32.mrf.mxu2 }
 0x1f1   : > { %v905_v52 = vsel %vm886_vm2, %v2252_v11, -inf }
 0x1f2   : > { %v2338_v57 = vpop.f32.mrf.mxu1 }
 0x1f3   : > { %v950_v59 = vsel %vm886_vm2, %v2338_v57, -inf }
 0x1f8   : > { %v2262_v16 = vpop.f32.mrf.mxu2 }
 0x1f9   : > { %v908_v62 = vsel %vm886_vm2, %v2262_v16, -inf }
 0x200   : > { %v2254_v12 = vpop.f32.mrf.mxu3 }
 0x201   : > { %v911_v13 = vsel %vm886_vm2, %v2254_v12, -inf }
 0x202   : > { %912 = vmax.xlane.f32.xlu2 %v911_v13 }
 0x208   : > { %v2268_v19 = vpop.f32.mrf.mxu3 }
 0x209   : > { %v914_v20 = vsel %vm886_vm2, %v2268_v19, -inf }
 0x20a   : > { %936 = vmax.xlane.f32.xlu2 %v935_v15  ;;  %v2353_v15 = vpop.f32.mrf.mxu1 }
 0x210   : > { %v2264_v17 = vpop.f32.mrf.mxu2  ;;  %v2282_v26 = vpop.f32.mrf.mxu3 }
 0x211   : > { %v917_v27 = vsel %vm886_vm2, %v2282_v26, -inf }
 0x212   : > { %894 = vmax.xlane.f32.xlu2 %v893_v18 }
 0x218   : > { %v2272_v21 = vpop.f32.mrf.mxu2  ;;  %v2298_v34 = vpop.f32.mrf.mxu3 }
 0x219   : > { %v962_v22 = vsel %vm886_vm2, %v2272_v21, -inf  ;;  %v920_v35 = vsel %vm886_vm2, %v2298_v34, -inf }
 0x21a   : > { %915 = vmax.xlane.f32.xlu2 %v914_v20  ;;  %963 = vmax.xlane.f32.xlu1 %v962_v22  ;;  %v953_v20 = vsel %vm886_vm2, %v2353_v15, -inf }
 0x220   : > { %v2280_v25 = vpop.f32.mrf.mxu2  ;;  %v2314_v45 = vpop.f32.mrf.mxu3 }
 0x221   : > { %v923_v46 = vsel %vm886_vm2, %v2314_v45, -inf }
 0x222   : > { %939 = vmax.xlane.f32.xlu2 %v938_v24 }
 0x228   : > { %v2286_v28 = vpop.f32.mrf.mxu2  ;;  %v2330_v53 = vpop.f32.mrf.mxu3 }
 0x229   : > { %v926_v55 = vsel %vm886_vm2, %v2330_v53, -inf }
 0x22a   : > { %918 = vmax.xlane.f32.xlu2 %v917_v27 }
 0x230   : > { %v2292_v31 = vpop.f32.mrf.mxu2  ;;  %v2346_v63 = vpop.f32.mrf.mxu3 }
 0x231   : > { %v929_v4 = vsel %vm886_vm2, %v2346_v63, -inf }
 0x232   : > { %942 = vmax.xlane.f32.xlu2 %v941_v30 }
 0x235   : > { %v2326_v51 = vpop.xlane.xlu2 %888 }
 0x238   : > { %v2294_v32 = vpop.f32.mrf.mxu2 }
 0x23a   : > { %900 = vmax.xlane.f32.xlu2 %v899_v33 }
 0x23d   : > { %v2332_v54 = vpop.xlane.xlu2 %891 }
 0x240   : > { %v2302_v36 = vpop.f32.mrf.mxu2 }
 0x242   : > { %921 = vmax.xlane.f32.xlu2 %v920_v35 }
 0x248   : > { %v2308_v39 = vpop.f32.mrf.mxu2 }
 0x249   : > { %v980_v40 = vsel %vm886_vm2, %v2308_v39, -inf }
 0x24a   : > { %945 = vmax.xlane.f32.xlu2 %v944_v38  ;;  %981 = vmax.xlane.f32.xlu0 %v980_v40  ;;  %v959_v38 = vsel %vm886_vm2, %v2264_v17, -inf }
 0x24d   : > { %v898_v41 = vpop.xlane.xlu1 %897 }
 0x24e   : > { %v986_v42 = vsub.f32 %v580_v1, %v898_v41  ;;  %v2372_v41 = vpop.f32.mrf.mxu1 }
 0x250   : > { %v1021_v43 = vmul.f32 1.442695, %v986_v42 }
 0x252   : > { %1952 = vpow2.f32 %v1021_v43  ;;  %903 = vmax.xlane.f32.xlu2 %v902_v44  ;;  %v956_v43 = vsel %vm886_vm2, %v2372_v41, -inf }
 0x258   : > { %v2318_v47 = vpop.eup %1952 }
 0x259   : > { %v1088_v48 = vsel %vm886_vm2, %v2318_v47, 0.0 }
 0x25a   : > { %924 = vmax.xlane.f32.xlu2 %v923_v46  ;;  %1089 = vadd.xlane.f32.xlu0 %v1088_v48  ;;  %v965_v46 = vsel %vm886_vm2, %v2280_v25, -inf }
 0x262   : > { %948 = vmax.xlane.f32.xlu2 %v947_v50 }
 0x26a   : > { %906 = vmax.xlane.f32.xlu2 %v905_v52 }
 0x272   : > { %927 = vmax.xlane.f32.xlu2 %v926_v55  ;;  %v968_v55 = vsel %vm886_vm2, %v2286_v28, -inf }
 0x275   : > { %v2336_v56 = vpop.xlane.xlu2 %912 }
 0x27a   : > { %951 = vmax.xlane.f32.xlu2 %v950_v59 }
 0x27d   : > { %v2342_v60 = vpop.xlane.xlu2 %936 }
 0x282   : > { %909 = vmax.xlane.f32.xlu2 %v908_v62 }
 0x285   : > { %v895_v1 = vpop.xlane.xlu2 %894 }
 0x286   : > { %v985_v2 = vsub.f32 %v2235_v0, %v895_v1  ;;  %v2361_v0 = vpop.f32.mrf.mxu3 }
 0x287   : > { %v932_v27 = vsel %vm886_vm2, %v2361_v0, -inf }
 0x288   : > { %v1019_v8 = vmul.f32 1.442695, %v985_v2 }
 0x28a   : > { %1954 = vpow2.f32 %v1019_v8  ;;  %930 = vmax.xlane.f32.xlu2 %v929_v4  ;;  %v971_v4 = vsel %vm886_vm2, %v2292_v31, -inf }
 0x28d   : > { %v2351_v13 = vpop.xlane.xlu2 %915 }
 0x290   : > { %v2355_v18 = vpop.eup %1954 }
 0x291   : > { %v1085_v22 = vsel %vm886_vm2, %v2355_v18, 0.0 }
 0x292   : > { %954 = vmax.xlane.f32.xlu2 %v953_v20  ;;  %1086 = vadd.xlane.f32.xlu1 %v1085_v22  ;;  %v984_v22 = vsub.f32 %v2230_v61, %v2332_v54 }
 0x295   : > { %v2363_v24 = vpop.xlane.xlu2 %939 }
 0x29a   : > { %933 = vmax.xlane.f32.xlu2 %v932_v27 }
 0x29d   : > { %v919_v30 = vpop.xlane.xlu2 %918 }
 0x29e   : > { %v993_v33 = vsub.f32 %v2282_v26, %v919_v30  ;;  %v1017_v30 = vmul.f32 1.442695, %v984_v22 }
 0x2a0   : > { %v1035_v35 = vmul.f32 1.442695, %v993_v33 }
 0x2a2   : > { %1956 = vpow2.f32 %v1035_v35  ;;  %960 = vmax.xlane.f32.xlu2 %v959_v38  ;;  %v977_v38 = vsel %vm886_vm2, %v2302_v36, -inf }
 0x2a5   : > { %v2370_v40 = vpop.xlane.xlu2 %942 }
 0x2a8   : > { %v2374_v42 = vpop.eup %1956 }
 0x2a9   : > { %v1109_v44 = vsel %vm886_vm2, %v2374_v42, 0.0 }
 0x2aa   : > { %957 = vmax.xlane.f32.xlu2 %v956_v43  ;;  %1110 = vadd.xlane.f32.xlu1 %v1109_v44 }
 0x2ad   : > { %v901_v26 = vpop.xlane.xlu2 %900 }
 0x2ae   : > { %v987_v35 = vsub.f32 %v2243_v6, %v901_v26 }
 0x2b0   : > { %v1023_v43 = vmul.f32 1.442695, %v987_v35 }
 0x2b2   : > { %966 = vmax.xlane.f32.xlu2 %v965_v46 }
 0x2b5   : > { %v922_v48 = vpop.xlane.xlu2 %921 }
 0x2b6   : > { %v994_v50 = vsub.f32 %v2298_v34, %v922_v48 }
 0x2b8   : > { %v1037_v52 = vmul.f32 1.442695, %v994_v50 }
 0x2ba   : > { %1958 = vpow2.f32 %v1037_v52  ;;  %969 = vmax.xlane.f32.xlu2 %v968_v55 }
 0x2bd   : > { %v946_v59 = vpop.xlane.xlu2 %945 }
 0x2be   : > { %v1002_v62 = vsub.f32 %v2304_v37, %v946_v59  ;;  %v974_v37 = vsel %vm886_vm2, %v2294_v32, -inf }
 0x2c0   : > { %v2386_v1 = vpop.eup %1958  ;;  %v1053_v2 = vmul.f32 1.442695, %v1002_v62 }
 0x2c1   : > { %v1112_v8 = vsel %vm886_vm2, %v2386_v1, 0.0 }
 0x2c2   : > { %1960 = vpow2.f32 %v1053_v2  ;;  %972 = vmax.xlane.f32.xlu2 %v971_v4  ;;  %1113 = vadd.xlane.f32.xlu0 %v1112_v8 }
 0x2c3   : > { %1962 = vpow2.f32 %v1017_v30 }
 0x2c4   : > { %1964 = vpow2.f32 %v1023_v43 }
 0x2c5   : > { %v904_v34 = vpop.xlane.xlu2 %903 }
 0x2c6   : > { %v988_v54 = vsub.f32 %v2248_v9, %v904_v34 }
 0x2c8   : > { %v2392_v20 = vpop.eup %1960  ;;  %v1025_v48 = vmul.f32 1.442695, %v988_v54 }
 0x2c9   : > { %v1136_v27 = vsel %vm886_vm2, %v2392_v20, 0.0  ;;  %v2403_v61 = vpop.eup %1962 }
 0x2ca   : > { %975 = vmax.xlane.f32.xlu2 %v974_v37  ;;  %1137 = vadd.xlane.f32.xlu0 %v1136_v27  ;;  %v1082_v46 = vsel %vm886_vm2, %v2403_v61, 0.0  ;;  %v2408_v52 = vpop.eup %1964  ;;  %1966 = vpow2.f32 %v1025_v48 }
 0x2cb   : > { %v1091_v26 = vsel %vm886_vm2, %v2408_v52, 0.0 }
 0x2cd   : > { %v925_v33 = vpop.xlane.xlu2 %924 }
 0x2ce   : > { %v995_v6 = vsub.f32 %v2314_v45, %v925_v33 }
 0x2d0   : > { %v1039_v55 = vmul.f32 1.442695, %v995_v6  ;;  %v2413_v62 = vpop.eup %1966 }
 0x2d1   : > { %v1094_v8 = vsel %vm886_vm2, %v2413_v62, 0.0 }
 0x2d2   : > { %978 = vmax.xlane.f32.xlu2 %v977_v38  ;;  %1968 = vpow2.f32 %v1039_v55 }
 0x2d5   : > { %v949_v44 = vpop.xlane.xlu2 %948 }
 0x2d6   : > { %v1003_v2 = vsub.f32 %v2322_v49, %v949_v44 }
 0x2d8   : > { %v1055_v45 = vmul.f32 1.442695, %v1003_v2  ;;  %v2419_v22 = vpop.eup %1968 }
 0x2d9   : > { %v1115_v33 = vsel %vm886_vm2, %v2419_v22, 0.0 }
 0x2da   : > { %1083 = vadd.xlane.f32.xlu2 %v1082_v46 }
 0x2dd   : > { %v907_v50 = vpop.xlane.xlu2 %906 }
 0x2e2   : > { %1092 = vadd.xlane.f32.xlu2 %v1091_v26 }
 0x2e5   : > { %v928_v59 = vpop.xlane.xlu2 %927 }
 0x2e6   : > { %v996_v9 = vsub.f32 %v2330_v53, %v928_v59  ;;  %v989_v53 = vsub.f32 %v2252_v11, %v907_v50 }
 0x2e8   : > { %v1041_v4 = vmul.f32 1.442695, %v996_v9  ;;  %v1027_v35 = vmul.f32 1.442695, %v989_v53  ;;  %v1001_v53 = vsub.f32 %v2288_v29, %v2370_v40  ;;  %v983_v40 = vsub.f32 %v2225_v58, %v2326_v51 }
 0x2ea   : > { %1970 = vpow2.f32 %v1041_v4  ;;  %1095 = vadd.xlane.f32.xlu2 %v1094_v8 }
 0x2eb   : > { %1972 = vpow2.f32 %v1055_v45 }
 0x2ed   : > { %v952_v34 = vpop.xlane.xlu2 %951 }
 0x2ee   : > { %v1004_v37 = vsub.f32 %v2338_v57, %v952_v34 }
 0x2f0   : > { %v2422_v27 = vpop.eup %1970  ;;  %v1057_v30 = vmul.f32 1.442695, %v1004_v37 }
 0x2f1   : > { %v1118_v49 = vsel %vm886_vm2, %v2422_v27, 0.0  ;;  %v2429_v43 = vpop.eup %1972 }
 0x2f2   : > { %1974 = vpow2.f32 %v1057_v30  ;;  %1119 = vadd.xlane.f32.xlu1 %v1118_v49  ;;  %1116 = vadd.xlane.f32.xlu2 %v1115_v33  ;;  %v1139_v46 = vsel %vm886_vm2, %v2429_v43, 0.0  ;;  %v1051_v49 = vmul.f32 1.442695, %v1001_v53 }
 0x2f3   : > { %1976 = vpow2.f32 %v1027_v35 }
 0x2f5   : > { %v910_v38 = vpop.xlane.xlu2 %909 }
 0x2f6   : > { %v990_v57 = vsub.f32 %v2262_v16, %v910_v38 }
 0x2f8   : > { %v2432_v44 = vpop.eup %1974  ;;  %v1029_v11 = vmul.f32 1.442695, %v990_v57 }
 0x2f9   : > { %v1142_v54 = vsel %vm886_vm2, %v2432_v44, 0.0  ;;  %v2438_v50 = vpop.eup %1976 }
 0x2fa   : > { %1978 = vpow2.f32 %v1029_v11  ;;  %1143 = vadd.xlane.f32.xlu1 %v1142_v54  ;;  %1140 = vadd.xlane.f32.xlu2 %v1139_v46  ;;  %v1097_v59 = vsel %vm886_vm2, %v2438_v50, 0.0  ;;  %v1015_v46 = vmul.f32 1.442695, %v983_v40  ;;  %v991_v40 = vsub.f32 %v2254_v12, %v2336_v56 }
 0x2fd   : > { %v931_v48 = vpop.xlane.xlu2 %930 }
 0x2fe   : > { %v997_v6 = vsub.f32 %v2346_v63, %v931_v48 }
 0x300   : > { %v2441_v26 = vpop.eup %1978  ;;  %v1043_v16 = vmul.f32 1.442695, %v997_v6 }
 0x301   : > { %v1100_v55 = vsel %vm886_vm2, %v2441_v26, 0.0 }
 0x302   : > { %1980 = vpow2.f32 %v1043_v16  ;;  %1101 = vadd.xlane.f32.xlu1 %v1100_v55  ;;  %1098 = vadd.xlane.f32.xlu2 %v1097_v59 }
 0x305   : > { %v955_v9 = vpop.xlane.xlu2 %954 }
 0x306   : > { %v1005_v2 = vsub.f32 %v2353_v15, %v955_v9  ;;  %v982_v9 = vpop.xlane.xlu0 %981 }
 0x308   : > { %v2448_v4 = vpop.eup %1980  ;;  %v1059_v8 = vmul.f32 1.442695, %v1005_v2  ;;  %v1014_v2 = vsub.f32 %v2308_v39, %v982_v9 }
 0x309   : > { %v1121_v63 = vsel %vm886_vm2, %v2448_v4, 0.0 }
 0x30a   : > { %1982 = vpow2.f32 %v1059_v8  ;;  %1122 = vadd.xlane.f32.xlu1 %v1121_v63  ;;  %v1077_v63 = vmul.f32 1.442695, %v1014_v2 }
 0x30d   : > { %v934_v45 = vpop.xlane.xlu2 %933 }
 0x30e   : > { %v998_v34 = vsub.f32 %v2361_v0, %v934_v45 }
 0x310   : > { %v2453_v37 = vpop.eup %1982  ;;  %v1045_v30 = vmul.f32 1.442695, %v998_v34 }
 0x311   : > { %v1145_v15 = vsel %vm886_vm2, %v2453_v37, 0.0 }
 0x312   : > { %1984 = vpow2.f32 %v1045_v30  ;;  %1146 = vadd.xlane.f32.xlu0 %v1145_v15  ;;  %v1000_v30 = vsub.f32 %v2276_v23, %v2363_v24  ;;  %v999_v23 = vsub.f32 %v2258_v14, %v2342_v60  ;;  %v1031_v60 = vmul.f32 1.442695, %v991_v40 }
 0x313   : > { %1986 = vpow2.f32 %v1051_v49  ;;  %v992_v49 = vsub.f32 %v2268_v19, %v2351_v13 }
 0x314   : > { %v1049_v39 = vmul.f32 1.442695, %v1000_v30  ;;  %v1047_v14 = vmul.f32 1.442695, %v999_v23 }
 0x315   : > { %v2459_v33 = vpop.xlane.xlu2 %960 }
 0x318   : > { %v2461_v35 = vpop.eup %1984 }
 0x319   : > { %v1124_v0 = vsel %vm886_vm2, %v2461_v35, 0.0  ;;  %v2465_v57 = vpop.eup %1986 }
 0x31a   : > { %1125 = vadd.xlane.f32.xlu1 %v1124_v0  ;;  %v1133_v54 = vsel %vm886_vm2, %v2465_v57, 0.0  ;;  %v1033_v0 = vmul.f32 1.442695, %v992_v49 }
 0x31d   : > { %v958_v38 = vpop.xlane.xlu2 %957 }
 0x31e   : > { %v1006_v29 = vsub.f32 %v2372_v41, %v958_v38 }
 0x320   : > { %v1061_v11 = vmul.f32 1.442695, %v1006_v29 }
 0x322   : > { %1988 = vpow2.f32 %v1061_v11  ;;  %1134 = vadd.xlane.f32.xlu1 %v1133_v54 }
 0x323   : > { %1990 = vpow2.f32 %v1015_v46  ;;  %v964_v46 = vpop.xlane.xlu1 %963 }
 0x325   : > { %v967_v48 = vpop.xlane.xlu2 %966 }
 0x326   : > { %v1009_v56 = vsub.f32 %v2280_v25, %v967_v48 }
 0x328   : > { %v2472_v6 = vpop.eup %1988  ;;  %v1067_v2 = vmul.f32 1.442695, %v1009_v56 }
 0x329   : > { %v1148_v16 = vsel %vm886_vm2, %v2472_v6, 0.0  ;;  %v2476_v41 = vpop.eup %1990 }
 0x32a   : > { %1149 = vadd.xlane.f32.xlu0 %v1148_v16  ;;  %v1079_v58 = vsel %vm886_vm2, %v2476_v41, 0.0 }
 0x32b   : > { %v1087_v48 = vpop.xlane.xlu1 %1086 }
 0x32d   : > { %v970_v55 = vpop.xlane.xlu2 %969 }
 0x32e   : > { %v1010_v19 = vsub.f32 %v2286_v28, %v970_v55 }
 0x332   : > { %1080 = vadd.xlane.f32.xlu0 %v1079_v58  ;;  %v1008_v58 = vsub.f32 %v2272_v21, %v964_v46 }
 0x334   : > { %v1065_v25 = vmul.f32 1.442695, %v1008_v58 }
 0x335   : > { %v973_v51 = vpop.xlane.xlu2 %972 }
 0x336   : > { %v1011_v59 = vsub.f32 %v2292_v31, %v973_v51 }
 0x338   : > { %v1071_v8 = vmul.f32 1.442695, %v1011_v59 }
 0x33a   : > { %1992 = vpow2.f32 %v1071_v8 }
 0x33b   : > { %1994 = vpow2.f32 %v1077_v63 }
 0x33d   : > { %v976_v45 = vpop.xlane.xlu2 %975 }
 0x33e   : > { %v1012_v34 = vsub.f32 %v2294_v32, %v976_v45 }
 0x340   : > { %v2483_v53 = vpop.eup %1992  ;;  %v1073_v15 = vmul.f32 1.442695, %v1012_v34  ;;  %v1007_v34 = vsub.f32 %v2264_v17, %v2459_v33 }
 0x341   : > { %v1163_v31 = vsel %vm886_vm2, %v2483_v53, 0.0  ;;  %v2491_v29 = vpop.eup %1994 }
 0x342   : > { %1996 = vpow2.f32 %v1073_v15  ;;  %1164 = vadd.xlane.f32.xlu2 %v1163_v31  ;;  %v1172_v54 = vsel %vm886_vm2, %v2491_v29, 0.0  ;;  %v1063_v31 = vmul.f32 1.442695, %v1007_v34 }
 0x343   : > { %1998 = vpow2.f32 %v1049_v39  ;;  %v2535_v39 = vpop.xlane.xlu1 %1110 }
 0x344   : > { %2000 = vpow2.f32 %v1033_v0 }
 0x345   : > { %v979_v38 = vpop.xlane.xlu2 %978 }
 0x346   : > { %v1013_v32 = vsub.f32 %v2302_v36, %v979_v38  ;;  %v1069_v36 = vmul.f32 1.442695, %v1010_v19 }
 0x348   : > { %v2496_v24 = vpop.eup %1996  ;;  %v1075_v13 = vmul.f32 1.442695, %v1013_v32 }
 0x349   : > { %v1166_v11 = vsel %vm886_vm2, %v2496_v24, 0.0  ;;  %v2507_v28 = vpop.eup %1998 }
 0x34a   : > { %2002 = vpow2.f32 %v1075_v13  ;;  %1167 = vadd.xlane.f32.xlu1 %v1166_v11  ;;  %1173 = vadd.xlane.f32.xlu2 %v1172_v54  ;;  %v2509_v55 = vpop.eup %2000  ;;  %v1130_v51 = vsel %vm886_vm2, %v2507_v28, 0.0 }
 0x34b   : > { %2004 = vpow2.f32 %v1047_v14  ;;  %v1106_v9 = vsel %vm886_vm2, %v2509_v55, 0.0 }
 0x34c   : > { %2006 = vpow2.f32 %v1069_v36 }
 0x34d   : > { %v2505_v16 = vpop.xlane.xlu2 %1083  ;;  %2008 = vpow2.f32 %v1031_v60  ;;  %v1090_v60 = vpop.xlane.xlu0 %1089 }
 0x34e   : > { %2010 = vpow2.f32 %v1067_v2 }
 0x34f   : > { %2012 = vpow2.f32 %v1065_v25 }
 0x350   : > { %v2511_v12 = vpop.eup %2002  ;;  %2014 = vpow2.f32 %v1063_v31 }
 0x351   : > { %v1169_v59 = vsel %vm886_vm2, %v2511_v12, 0.0  ;;  %v2521_v8 = vpop.eup %2004 }
 0x352   : > { %1131 = vadd.xlane.f32.xlu1 %v1130_v51  ;;  %1170 = vadd.xlane.f32.xlu0 %v1169_v59  ;;  %v2523_v45 = vpop.eup %2006  ;;  %v1127_v30 = vsel %vm886_vm2, %v2521_v8, 0.0 }
 0x353   : > { %1107 = vadd.xlane.f32.xlu2 %v1106_v9  ;;  %v2525_v21 = vpop.eup %2008  ;;  %v1160_v15 = vsel %vm886_vm2, %v2523_v45, 0.0 }
 0x354   : > { %v1103_v49 = vsel %vm886_vm2, %v2525_v21, 0.0  ;;  %v2537_v38 = vpop.eup %2010 }
 0x355   : > { %v1093_v63 = vpop.xlane.xlu2 %1092  ;;  %v2539_v17 = vpop.eup %2012  ;;  %v1157_v33 = vsel %vm886_vm2, %v2537_v38, 0.0 }
 0x356   : > { %v1154_v32 = vsel %vm886_vm2, %v2539_v17, 0.0  ;;  %v2545_v13 = vpop.eup %2014  ;;  %v1114_v9 = vpop.xlane.xlu0 %1113 }
 0x357   : > { %v1151_v40 = vsel %vm886_vm2, %v2545_v13, 0.0 }
 0x35a   : > { %1128 = vadd.xlane.f32.xlu1 %v1127_v30  ;;  %1161 = vadd.xlane.f32.xlu0 %v1160_v15 }
 0x35b   : > { %1104 = vadd.xlane.f32.xlu2 %v1103_v49 }
 0x35d   : > { %v1096_v0 = vpop.xlane.xlu2 %1095 }
 0x362   : > { %1158 = vadd.xlane.f32.xlu0 %v1157_v33 }
 0x363   : > { %1155 = vadd.xlane.f32.xlu2 %v1154_v32 }
 0x365   : > { %v1120_v23 = vpop.xlane.xlu1 %1119  ;;  %v1117_v19 = vpop.xlane.xlu2 %1116 }
 0x36a   : > { %1152 = vadd.xlane.f32.xlu0 %v1151_v40 }
 0x36d   : > { %v2549_v11 = vpop.xlane.xlu1 %1143  ;;  %v2551_v54 = vpop.xlane.xlu2 %1140 }
 0x375   : > { %v1102_v14 = vpop.xlane.xlu1 %1101  ;;  %v1099_v36 = vpop.xlane.xlu2 %1098 }
 0x376   : > { %2016 = vrcp.f32 %v1102_v14 }
 0x377   : > { %2018 = vrcp.f32 %v1099_v36 }
 0x378   : > { %2020 = vrcp.f32 %v1096_v0 }
 0x379   : > { %2022 = vrcp.f32 %v1093_v63 }
 0x37a   : > { %2024 = vrcp.f32 %v1090_v60 }
 0x37b   : > { %2026 = vrcp.f32 %v1087_v48 }
 0x37c   : > { %v2017_v46 = vpop.eup %2016  ;;  %2028 = vrcp.f32 %v2505_v16 }
 0x37d   : > { %v1214_v56 = vmul.f32 %v2017_v46, %v2441_v26  ;;  %v2019_v58 = vpop.eup %2018  ;;  %v1123_v2 = vpop.xlane.xlu1 %1122 }
 0x37e   : > { %v1213_v51 = vmul.f32 %v2019_v58, %v2438_v50  ;;  %v2021_v59 = vpop.eup %2020  ;;  %v1138_v50 = vpop.xlane.xlu0 %1137 }
 0x37f   : > { %1846 = vmatpush.xpose.msk.msrb.mxu3 %vm886_vm2, %v1214_v56  ;;  %v1212_v25 = vmul.f32 %v2021_v59, %v2413_v62  ;;  %v2023_v34 = vpop.eup %2022 }
 0x380   : > { %v1211_v26 = vmul.f32 %v2023_v34, %v2408_v52  ;;  %v2025_v30 = vpop.eup %2024 }
 0x381   : > { %v1210_v15 = vmul.f32 %v2025_v30, %v2318_v47  ;;  %v2027_v49 = vpop.eup %2026 }
 0x382   : > { %v1209_v62 = vmul.f32 %v2027_v49, %v2355_v18  ;;  %v2029_v31 = vpop.eup %2028 }
 0x383   : > { %1847 = vmatpush.xpose.msk.msrb.mxu3 %vm886_vm2, %v1213_v51  ;;  %v1208_v0 = vmul.f32 %v2029_v31, %v2403_v61 }
 0x386   : > { %v1147_v48 = vpop.xlane.xlu0 %1146 }
 0x387   : > { %1848 = vmatpush.xpose.msk.msrb.mxu3 %vm886_vm2, %v1212_v25 }
 0x38b   : > { %1849 = vmatpush.xpose.msk.msrb.mxu3 %vm886_vm2, %v1211_v26 }
 0x38d   : > { %v1126_v63 = vpop.xlane.xlu1 %1125 }
 0x38e   : > { %2030 = vrcp.f32 %v1126_v63 }
 0x38f   : > { %1850 = vmatpush.xpose.msk.msrb.mxu3 %vm886_vm2, %v1210_v15  ;;  %2032 = vrcp.f32 %v1123_v2 }
 0x390   : > { %2034 = vrcp.f32 %v1120_v23 }
 0x391   : > { %2036 = vrcp.f32 %v1117_v19 }
 0x392   : > { %2038 = vrcp.f32 %v1114_v9 }
 0x393   : > { %1851 = vmatpush.xpose.msk.msrb.mxu3 %vm886_vm2, %v1209_v62  ;;  %2040 = vrcp.f32 %v2535_v39 }
 0x394   : > { %v2031_v52 = vpop.eup %2030 }
 0x395   : > { %v1222_v16 = vmul.f32 %v2031_v52, %v2461_v35  ;;  %v2033_v33 = vpop.eup %2032 }
 0x396   : > { %v1221_v47 = vmul.f32 %v2033_v33, %v2448_v4  ;;  %v2035_v32 = vpop.eup %2034 }
 0x397   : > { %1852 = vmatpush.xpose.msk.msrb.mxu3 %vm886_vm2, %v1208_v0  ;;  %1855 = vmatpush.xpose.msk.msrb.mxu0 %vm886_vm2, %v1222_v16  ;;  %v1220_v23 = vmul.f32 %v2035_v32, %v2422_v27  ;;  %v2037_v40 = vpop.eup %2036 }
 0x398   : > { %v1219_v61 = vmul.f32 %v2037_v40, %v2419_v22  ;;  %v2039_v35 = vpop.eup %2038 }
 0x399   : > { %v1218_v4 = vmul.f32 %v2039_v35, %v2386_v1  ;;  %v2041_v14 = vpop.eup %2040 }
 0x39a   : > { %v1217_v27 = vmul.f32 %v2041_v14, %v2374_v42  ;;  %v1474_v14 = vld [vmem:[%s2717_s6] sm:$0xff] }
 0x39b   : > { %1856 = vmatpush.xpose.msk.msrb.mxu0 %vm886_vm2, %v1221_v47 }
 0x39d   : > { %v1150_v18 = vpop.xlane.xlu0 %1149 }
 0x39e   : > { %2042 = vrcp.f32 %v1150_v18 }
 0x39f   : > { %1857 = vmatpush.xpose.msk.msrb.mxu0 %vm886_vm2, %v1220_v23 }
 0x3a3   : > { %1858 = vmatpush.xpose.msk.msrb.mxu0 %vm886_vm2, %v1219_v61 }
 0x3a4   : > { %v2043_v36 = vpop.eup %2042 }
 0x3a5   : > { %v1081_v19 = vpop.xlane.xlu0 %1080  ;;  %v1230_v60 = vmul.f32 %v2043_v36, %v2472_v6  ;;  %v2088_v36 = vmov 0  }
 0x3a6   : > { %2044 = vrcp.f32 %v1081_v19  ;;  %1951 = vset.pattern.permute.xlu0 %v2088_v36  ;;  %1949 = vset.pattern.permute.xlu1 %v2088_v36 }
 0x3a7   : > { %1859 = vmatpush.xpose.msk.msrb.mxu0 %vm886_vm2, %v1218_v4  ;;  %2046 = vrcp.f32 %v1147_v48  ;;  %1480 = vperm.xlu0 %1951, %v1474_v14  }
 0x3a8   : > { %2048 = vrcp.f32 %v2549_v11  ;;  %v1135_v11 = vpop.xlane.xlu1 %1134  ;;  %1950 = vset.pattern.permute.xlu2 %v2088_v36 }
 0x3a9   : > { %2050 = vrcp.f32 %v2551_v54 }
 0x3aa   : > { %2052 = vrcp.f32 %v1138_v50 }
 0x3ab   : > { %1860 = vmatpush.xpose.msk.msrb.mxu0 %vm886_vm2, %v1217_v27  ;;  %2054 = vrcp.f32 %v1135_v11  ;;  %v1476_v27 = vld [vmem:[%s2717_s6 + $0x10] sm:$0xff]  ;;  %v1934_v11 = vld [vmem:[%s2716_s5] sm:$0xff] }
 0x3ac   : > { %v2045_v39 = vpop.eup %2044  ;;  %1490 = vperm.xlu1 %1949, %v1476_v27  }
 0x3ad   : > { %v1207_v22 = vmul.f32 %v2045_v39, %v2476_v41  ;;  %v2047_v46 = vpop.eup %2046  ;;  %v1477_v39 = vld [vmem:[%s2717_s6 + $0x18] sm:$0xff] }
 0x3ae   : > { %v1229_v42 = vmul.f32 %v2047_v46, %v2453_v37  ;;  %v2049_v1 = vpop.eup %2048  ;;  %1495 = vperm.xlu2 %1950, %v1477_v39   ;;  %v1546_v46 = vld [vmem:[%s2719_s8 + $0x18] sm:$0xff] }
 0x3af   : > { %1853 = vmatpush.xpose.msk.msrb.mxu3 %vm886_vm2, %v1207_v22  ;;  %v1228_v6 = vmul.f32 %v2049_v1, %v2432_v44  ;;  %v2051_v56 = vpop.eup %2050 }
 0x3b0   : > { %v1227_v58 = vmul.f32 %v2051_v56, %v2429_v43  ;;  %v2053_v54 = vpop.eup %2052  ;;  %v1543_v56 = vld [vmem:[%s2719_s8] sm:$0xff] }
 0x3b1   : > { %v1226_v37 = vmul.f32 %v2053_v54, %v2392_v20  ;;  %v2055_v59 = vpop.eup %2054 }
 0x3b2   : > { %1854 = vmatmul.msk.f32.vlgmr.msrb.gmra.mxu3 %vm886_vm2, %v2238_v3  ;;  %v1225_v9 = vmul.f32 %v2055_v59, %v2465_v57 }
 0x3b3   : > { %1864 = vmatpush.xpose.msk.msra.mxu3 %vm886_vm2, %v1230_v60 }
 0x3b4   : > { %1564 = vperm.xlu1 %1949, %v1546_v46  }
 0x3b5   : > { %v1165_v41 = vpop.xlane.xlu2 %1164 }
 0x3b7   : > { %1865 = vmatpush.xpose.msk.msra.mxu3 %vm886_vm2, %v1229_v42  ;;  %v1475_v42 = vld [vmem:[%s2717_s6 + $0x8] sm:$0xff] }
 0x3b8   : > { %1485 = vperm.xlu2 %1950, %v1475_v42  }
 0x3bb   : > { %1866 = vmatpush.xpose.msk.msra.mxu3 %vm886_vm2, %v1228_v6  ;;  %v1545_v6 = vld [vmem:[%s2719_s8 + $0x10] sm:$0xff] }
 0x3bd   : > { %v1168_v3 = vpop.xlane.xlu1 %1167  ;;  %v1174_v51 = vpop.xlane.xlu2 %1173 }
 0x3bf   : > { %1867 = vmatpush.xpose.msk.msra.mxu3 %vm886_vm2, %v1227_v58  ;;  %v1935_v58 = vld [vmem:[%s2716_s5 + $0x8] sm:$0xff] }
 0x3c0   : > { %1559 = vperm.xlu2 %1950, %v1545_v6  }
 0x3c3   : > { %1868 = vmatpush.xpose.msk.msra.mxu3 %vm886_vm2, %v1226_v37 }
 0x3c5   : > { %v1132_v44 = vpop.xlane.xlu1 %1131  ;;  %v1171_v25 = vpop.xlane.xlu0 %1170 }
 0x3c6   : > { %2056 = vrcp.f32 %v1132_v44  ;;  %v1108_v2 = vpop.xlane.xlu2 %1107 }
 0x3c7   : > { %1869 = vmatpush.xpose.msk.msra.mxu3 %vm886_vm2, %v1225_v9  ;;  %2058 = vrcp.f32 %v1108_v2 }
 0x3c8   : > { %2060 = vrcp.f32 %v1174_v51  ;;  %1549 = vperm.xlu2 %1950, %v1543_v56  }
 0x3cc   : > { %v2057_v43 = vpop.eup %2056 }
 0x3cd   : > { %v2059_v34 = vpop.eup %2058  ;;  %v1129_v26 = vpop.xlane.xlu1 %1128  ;;  %v1224_v30 = vmul.f32 %v2057_v43, %v2507_v28 }
 0x3ce   : > { %2062 = vrcp.f32 %v1129_v26  ;;  %v1105_v20 = vpop.xlane.xlu2 %1104  ;;  %v1216_v50 = vmul.f32 %v2059_v34, %v2509_v55  ;;  %v2061_v57 = vpop.eup %2060 }
 0x3cf   : > { %2064 = vrcp.f32 %v1105_v20  ;;  %1870 = vmatpush.xpose.msk.msra.mxu3 %vm886_vm2, %v1224_v30  ;;  %v1162_v63 = vpop.xlane.xlu0 %1161  ;;  %v1238_v28 = vmul.f32 %v2061_v57, %v2491_v29 }
 0x3d0   : > { %1861 = vmatpush.xpose.msk.msrb.mxu0 %vm886_vm2, %v1216_v50  ;;  %2066 = vrcp.f32 %v1171_v25 }
 0x3d1   : > { %2068 = vrcp.f32 %v1168_v3 }
 0x3d2   : > { %2070 = vrcp.f32 %v1165_v41  ;;  %v1544_v41 = vld [vmem:[%s2719_s8 + $0x8] sm:$0xff] }
 0x3d3   : > { %2072 = vrcp.f32 %v1162_v63  ;;  %1554 = vperm.xlu1 %1949, %v1544_v41  }
 0x3d4   : > { %v2063_v15 = vpop.eup %2062 }
 0x3d5   : > { %v2065_v49 = vpop.eup %2064  ;;  %v1223_v62 = vmul.f32 %v2063_v15, %v2521_v8 }
 0x3d6   : > { %v1215_v31 = vmul.f32 %v2065_v49, %v2525_v21  ;;  %v2067_v55 = vpop.eup %2066  ;;  %v1156_v0 = vpop.xlane.xlu2 %1155  ;;  %v1936_v49 = vld [vmem:[%s2718_s7] sm:$0xff] }
 0x3d7   : > { %1871 = vmatpush.xpose.msk.msra.mxu3 %vm886_vm2, %v1223_v62  ;;  %v1237_v8 = vmul.f32 %v2067_v55, %v2511_v12  ;;  %v2069_v52 = vpop.eup %2068  ;;  %v1159_v21 = vpop.xlane.xlu0 %1158  ;;  %v1937_v62 = vld [vmem:[%s2718_s7 + $0x8] sm:$0xff] }
 0x3d8   : > { %1862 = vmatpush.xpose.msk.msrb.mxu0 %vm886_vm2, %v1215_v31  ;;  %v1236_v29 = vmul.f32 %v2069_v52, %v2496_v24  ;;  %v2071_v48 = vpop.eup %2070  ;;  %2074 = vrcp.f32 %v1159_v21 }
 0x3d9   : > { %v1235_v16 = vmul.f32 %v2071_v48, %v2483_v53  ;;  %2076 = vrcp.f32 %v1156_v0 }
 0x3da   : > { %1872 = vmatmul.msk.f32.vlgmr.msra.gmra.mxu3 %vm886_vm2, %v2245_v7  ;;  %v2073_v7 = vpop.eup %2072 }
 0x3db   : > { %1863 = vmatmul.msk.f32.vlgmr.msrb.gmra.mxu0 %vm886_vm2, %v2241_v5  ;;  %v1234_v12 = vmul.f32 %v2073_v7, %v2523_v45 }
 0x3dc   : > { %1873 = vmatpush.xpose.msk.msra.mxu0 %vm886_vm2, %v1238_v28 }
 0x3de   : > { %v2075_v33 = vpop.eup %2074 }
 0x3df   : > { %v1153_v5 = vpop.xlane.xlu0 %1152  ;;  %v1233_v24 = vmul.f32 %v2075_v33, %v2537_v38  ;;  %v2077_v47 = vpop.eup %2076 }
 0x3e0   : > { %1874 = vmatpush.xpose.msk.msra.mxu0 %vm886_vm2, %v1237_v8  ;;  %2078 = vrcp.f32 %v1153_v5  ;;  %v1232_v32 = vmul.f32 %v2077_v47, %v2539_v17  ;;  %v1932_v17 = vld [vmem:[%s2715_s4] sm:$0xff] }
 0x3e4   : > { %1875 = vmatpush.xpose.msk.msra.mxu0 %vm886_vm2, %v1236_v29 }
 0x3e6   : > { %v2079_v18 = vpop.eup %2078 }
 0x3e7   : > { %v1231_v53 = vmul.f32 %v2079_v18, %v2545_v13  ;;  %v1933_v13 = vld [vmem:[%s2715_s4 + $0x8] sm:$0xff] }
 0x3e8   : > { %1876 = vmatpush.xpose.msk.msra.mxu0 %vm886_vm2, %v1235_v16 }
 0x3ec   : > { %1877 = vmatpush.xpose.msk.msra.mxu0 %vm886_vm2, %v1234_v12 }
 0x3f0   : > { %1878 = vmatpush.xpose.msk.msra.mxu0 %vm886_vm2, %v1233_v24 }
 0x3f4   : > { %1879 = vmatpush.xpose.msk.msra.mxu0 %vm886_vm2, %v1232_v32 }
 0x3f8   : > { %1880 = vmatpush.xpose.msk.msra.mxu0 %vm886_vm2, %v1231_v53 }
 0x3fb   : > { %1881 = vmatmul.msk.f32.vlgmr.msra.gmra.mxu0 %vm886_vm2, %v2250_v10 }
 0x408   : > { %v1496_v51 = vpop.permute.xlu2 %1495 }
 0x412   : > { %v1486_v9 = vpop.permute.xlu2 %1485 }
 0x419   : > { %v1481_v2 = vpop.permute.xlu0 %1480 }
 0x41a   : > { %v1560_v31 = vpop.permute.xlu2 %1559 }
 0x41e   : > { %v1491_v59 = vpop.permute.xlu1 %1490 }
 0x422   : > { %v1550_v55 = vpop.permute.xlu2 %1549 }
 0x426   : > { %v1565_v28 = vpop.permute.xlu1 %1564 }
 0x435   : > { %v1283_v45 = vpop.f32.mrf.mxu3 }
 0x445   : > { %v1555_v29 = vpop.permute.xlu1 %1554 }
 0x458   : > { %v1330_v23 = vpop.f32.mrf.mxu0 }
 0x459   : > { %v1431_v35 = vpack.c.bf16 %v1330_v23, %v1283_v45  ;;  %v2089_v23 = vmov 1.0  }
 0x45d   : > { %v1377_v40 = vpop.f32.mrf.mxu3 }
 0x478   : > { %v1424_v61 = vpop.f32.mrf.mxu0 }
 0x479   : > { %v1432_v38 = vpack.c.bf16 %v1424_v61, %v1377_v40 }
 0x47b   : > { %1455 = vmatpush.bf16.msra.mxu1 %v1432_v38 }
 0x47f   : > { %1456 = vmatpush.bf16.msra.mxu1 %v1431_v35 }
 0x482   : > { %1890 = vmatmul.msk.bf16.vlgmr.msra.gmra.mxu1 %vm416_vm0, %v1932_v17 }
 0x492   : > { %1891 = vmatmul.msk.bf16.gmra.mxu1 %vm416_vm0, %v1933_v13 }
 0x4ff   : > { %v1458_v10 = vpop.f32.mrf.mxu1 }
 0x507   : > { %v2637_v19 = vpop.f32.mrf.mxu1 }
 0x508   : > { %v1472_v1 = vpack.c.bf16 %v2637_v19, %v1458_v10 }
 0x50f   : > { %v2639_v4 = vpop.f32.mrf.mxu1 }
 0x517   : > { %v1465_v22 = vpop.f32.mrf.mxu1 }
 0x518   : > { %v1473_v60 = vpack.c.bf16 %v1465_v22, %v2639_v4 }
 0x51a   : > { %1520 = vmatpush.bf16.msrb.mxu3 %v1473_v60 }
 0x51e   : > { %1521 = vmatpush.bf16.msrb.mxu3 %v1472_v1 }
 0x521   : > { %1900 = vmatmul.msk.bf16.vlgmr.msrb.gmra.mxu3 %vm416_vm0, %v1934_v11 }
 0x531   : > { %1901 = vmatmul.msk.bf16.gmra.mxu3 %vm416_vm0, %v1935_v58 }
 0x5a4   : > { %v1523_v54 = vpop.f32.mrf.mxu3 }
 0x5a5   : > { %v1524_v26 = vadd.f32 %v1523_v54, %v1481_v2 }
 0x5a7   : > { %v1533_v63 = vmax.f32 %v1524_v26, 0.0 }
 0x5ac   : > { %v1525_v3 = vpop.f32.mrf.mxu3 }
 0x5ad   : > { %v1526_v43 = vadd.f32 %v1525_v3, %v1486_v9 }
 0x5af   : > { %v1534_v50 = vmax.f32 %v1526_v43, 0.0 }
 0x5b1   : > { %v1541_v15 = vpack.c.bf16 %v1534_v50, %v1533_v63 }
 0x5b4   : > { %v1528_v37 = vpop.f32.mrf.mxu3 }
 0x5b5   : > { %v1529_v44 = vadd.f32 %v1528_v37, %v1491_v59 }
 0x5b7   : > { %v1535_v30 = vmax.f32 %v1529_v44, 0.0 }
 0x5bc   : > { %v1530_v25 = vpop.f32.mrf.mxu3 }
 0x5bd   : > { %v1531_v34 = vadd.f32 %v1530_v25, %v1496_v51 }
 0x5bf   : > { %v1536_v20 = vmax.f32 %v1531_v34, 0.0 }
 0x5c1   : > { %v1542_v57 = vpack.c.bf16 %v1536_v20, %v1535_v30 }
 0x5c3   : > { %1589 = vmatpush.bf16.msrb.mxu0 %v1542_v57 }
 0x5c7   : > { %1590 = vmatpush.bf16.msrb.mxu0 %v1541_v15 }
 0x5ca   : > { %1910 = vmatmul.msk.bf16.vlgmr.msrb.gmra.mxu0 %vm416_vm0, %v1936_v49 }
 0x5da   : > { %1911 = vmatmul.msk.bf16.gmra.mxu0 %vm416_vm0, %v1937_v62 }
 0x647   : > { %v1592_v8 = vpop.f32.mrf.mxu0 }
 0x648   : > { %v1593_v52 = vadd.f32 %v1592_v8, %v1550_v55 }
 0x64a   : > { %v1602_v21 = vadd.f32 %v1593_v52, %v1458_v10 }
 0x64c   : > { %1606 = vst.msk [vmem:[%s366_s18] sm:$0xff] %vm886_vm2, %v1602_v21  ;;  %v1645_v45 = vmul.f32 %v1602_v21, %v1602_v21 }
 0x64f   : > { %v1594_v48 = vpop.f32.mrf.mxu0 }
 0x650   : > { %v1595_v0 = vadd.f32 %v1594_v48, %v1555_v29 }
 0x652   : > { %v1603_v16 = vadd.f32 %v1595_v0, %v2637_v19 }
 0x654   : > { %1607 = vst.msk [vmem:[%s366_s18 + $0x8] sm:$0xff] %vm886_vm2, %v1603_v16  ;;  %v1646_v53 = vmul.f32 %v1603_v16, %v1603_v16 }
 0x657   : > { %v1597_v7 = vpop.f32.mrf.mxu0 }
 0x658   : > { %v1598_v5 = vadd.f32 %v1597_v7, %v1560_v31 }
 0x65a   : > { %v1604_v12 = vadd.f32 %v1598_v5, %v2639_v4 }
 0x65c   : > { %1608 = vst.msk [vmem:[%s366_s18 + $0x10] sm:$0xff] %vm886_vm2, %v1604_v12  ;;  %v1647_v18 = vmul.f32 %v1604_v12, %v1604_v12 }
 0x65f   : > { %v1599_v33 = vpop.f32.mrf.mxu0 }
 0x660   : > { %v1600_v24 = vadd.f32 %v1599_v33, %v1565_v28 }
 0x662   : > { %v1605_v47 = vadd.f32 %v1600_v24, %v1465_v22 }
 0x664   : > { %1609 = vst.msk [vmem:[%s366_s18 + $0x18] sm:$0xff] %vm886_vm2, %v1605_v47  ;;  %v1648_v32 = vmul.f32 %v1605_v47, %v1605_v47  ;;  %1912 = vmatpush.xpose.msk.msra.mxu2 %vm886_vm2, %v1605_v47 }
 0x666   : > { %1917 = vmatpush.xpose.msk.msrb.mxu1 %vm886_vm2, %v1648_v32 }
 0x668   : > { %1913 = vmatpush.xpose.msk.msra.mxu2 %vm886_vm2, %v1604_v12 }
 0x66a   : > { %1918 = vmatpush.xpose.msk.msrb.mxu1 %vm886_vm2, %v1647_v18 }
 0x66c   : > { %1914 = vmatpush.xpose.msk.msra.mxu2 %vm886_vm2, %v1603_v16 }
 0x66e   : > { %1919 = vmatpush.xpose.msk.msrb.mxu1 %vm886_vm2, %v1646_v53 }
 0x670   : > { %1915 = vmatpush.xpose.msk.msra.mxu2 %vm886_vm2, %v1602_v21 }
 0x672   : > { %1920 = vmatpush.xpose.msk.msrb.mxu1 %vm886_vm2, %v1645_v45 }
 0x673   : > { %1916 = vmatmul.msk.f32.vlgmr.msra.gmra.mxu2 %vm886_vm2, %v2089_v23 }
 0x675   : > { %1921 = vmatmul.msk.f32.vlgmr.msrb.gmra.mxu1 %vm886_vm2, %v2089_v23 }
 0x6f2   : > { %v1678_v40 = vpop.f32.mrf.mxu1 }
 0x6f3   : > { %v1682_v61 = vrot.slane %v1678_v40, 7 }
 0x6f6   : > { %v1642_v38 = vpop.f32.mrf.mxu2 }
 0x6f7   : > { %v1685_v35 = vsel %vm1684_vm3, %v1642_v38, %v1682_v61 }
 0x6f8   : > { %1687 = vst.msk [vmem:[%s370_s21] sm:$0x3] %vm1686_vm4, %v1685_v35 }
 0x6f9 PF: > { %s21_s13 = sadd.s32 1, %s2086_s13  }
 0x6fa   : > { %p18_p4 = scmp.ge.s32.totalorder %s21_s13, 4  }
 0x6fc   :  { %20 = sbr.rel (!%p18_p4) target bundleno = 1 (0x1), region = 98 }

</bundles_post_ra>
